<compile_context>
chip_gen: v7x
topology: tpu7x:2x2x1
jax: 0.10.0
libtpu: 0.0.40
codegen_flags: <defaults>
</compile_context>

<pallas_src>
import functools

import jax
import jax.numpy as jnp
from jax.experimental import pallas as pl
from jax.experimental.pallas import tpu as pltpu


def linear_block_kernel(x_ref, w_ref, b_ref, o_ref, acc_ref, *, mxu_dtype=None):
    """One (tm, tn) output tile; k axis (grid axis 2) is the reduction."""
    k = pl.program_id(2)

    @pl.when(k == 0)
    def _init():
        acc_ref[...] = jnp.zeros_like(acc_ref)

    x = x_ref[...]
    w = w_ref[...]
    if mxu_dtype is not None:
        # Optional bf16 MXU feeding (v6e/v7x); accumulation stays f32.
        x = x.astype(mxu_dtype)
        w = w.astype(mxu_dtype)
    acc_ref[...] += jnp.dot(x, w, preferred_element_type=jnp.float32)

    @pl.when(k == pl.num_programs(2) - 1)
    def _finalize():
        z = acc_ref[...] + b_ref[...]          # (1, tn) broadcasts over rows
        o_ref[...] = jnp.maximum(z, 0.0).astype(o_ref.dtype)


def _choose_tiles(M, K, N, tm, tn, tk):
    """Clamp tiles to legal TPU block shapes and keep the K reduction exact."""
    # M tile: multiple of 8 (sublane) or the full dim.
    if M <= tm:
        tm = M
    else:
        tm = max(8, (tm // 8) * 8)
    # N tile: multiple of 128 (lane) or the full dim.
    if N <= tn:
        tn = N
    else:
        tn = max(128, (tn // 128) * 128)
    # K tile: must divide K evenly (reduction axis) and be a multiple of 128,
    # otherwise fall back to the full K as a single block.
    if K <= tk or K % 128 != 0:
        tk = K
    else:
        cand = (min(tk, K) // 128) * 128
        while K % cand != 0:
            cand -= 128
        tk = cand
    return tm, tn, tk


def linear_block(x, w_kn, bias, *, tm=256, tn=256, tk=256, mxu_dtype=None):
    """relu(x @ w_kn + bias).

    x:    (M, K) float32
    w_kn: (K, N) float32  -- nn.Linear weight stored pre-transposed (once, at init)
    bias: (N,)   float32
    """
    M, K = x.shape
    K2, N = w_kn.shape
    assert K == K2
    assert bias.shape == (N,)
    b2d = bias.reshape(1, N)  # 2-D for TPU layout (metadata-only reshape)

    tm, tn, tk = _choose_tiles(M, K, N, tm, tn, tk)
    grid = (pl.cdiv(M, tm), pl.cdiv(N, tn), K // tk)

    kernel = functools.partial(linear_block_kernel, mxu_dtype=mxu_dtype)

    cost = pl.CostEstimate(
        flops=2 * M * N * K,
        transcendentals=0,
        bytes_accessed=4 * (M * K + K * N + N + M * N),
    )

    return pl.pallas_call(
        kernel,
        out_shape=jax.ShapeDtypeStruct((M, N), x.dtype),
        grid_spec=pltpu.PrefetchScalarGridSpec(
            num_scalar_prefetch=0,
            grid=grid,
            in_specs=[
                pl.BlockSpec((tm, tk), lambda i, j, k: (i, k)),   # x tile (streamed)
                pl.BlockSpec((tk, tn), lambda i, j, k: (k, j)),   # weight tile
                pl.BlockSpec((1, tn), lambda i, j, k: (0, j)),    # bias tile
            ],
            out_specs=pl.BlockSpec((tm, tn), lambda i, j, k: (i, j)),
            scratch_shapes=[pltpu.VMEM((tm, tn), jnp.float32)],   # f32 accumulator
        ),
        compiler_params=pltpu.CompilerParams(
            dimension_semantics=("parallel", "parallel", "arbitrary")),
        cost_estimate=cost,
    )(x, w_kn, b2d)


def init_linear_params(key, num_inputs, num_outputs):
    """nn.Linear default init (uniform +/- 1/sqrt(fan_in)), weight stored as (K, N).

    The transpose to (K, N) happens here, once, at parameter creation time --
    never inside the forward call.
    """
    kw, kb = jax.random.split(key)
    bound = 1.0 / (float(num_inputs) ** 0.5)
    w_kn = jax.random.uniform(kw, (num_inputs, num_outputs),
                              minval=-bound, maxval=bound, dtype=jnp.float32)
    bias = jax.random.uniform(kb, (num_outputs,),
                              minval=-bound, maxval=bound, dtype=jnp.float32)
    return w_kn, bias


if __name__ == "__main__":
    key = jax.random.PRNGKey(0)
    k_x, k_p, k_x2, k_p2 = jax.random.split(key, 4)

    # Case 1: lane-dense, tiled shapes (exercises M tiling, K accumulation,
    # full 3-D grid and the pl.when init/finalize path).
    M, K, N = 512, 512, 256
    x = jax.random.normal(k_x, (M, K), dtype=jnp.float32)
    w_kn, bias = init_linear_params(k_p, K, N)

    out = jax.block_until_ready(linear_block(x, w_kn, bias))
    ref = jnp.maximum(x @ w_kn + bias, 0.0)
    assert out.shape == (M, N)
    assert jnp.allclose(out, ref, atol=1e-4, rtol=1e-4)

    # Case 2: tiny module-sized shapes (single-tile fallback path; blocks equal
    # full dims so no (8,128) padding issues).
    M2, K2, N2 = 8, 32, 64
    x2 = jax.random.normal(k_x2, (M2, K2), dtype=jnp.float32)
    w2, b2 = init_linear_params(k_p2, K2, N2)

    out2 = jax.block_until_ready(linear_block(x2, w2, b2))
    ref2 = jnp.maximum(x2 @ w2 + b2, 0.0)
    assert out2.shape == (M2, N2)
    assert jnp.allclose(out2, ref2, atol=1e-5, rtol=1e-5)

    print("KERNEL_OK")
</pallas_src>

<mosaic_0001>
module attributes {stable_mosaic.version = 11 : i64} {
  func.func @linear_block_kernel(%arg0: i32, %arg1: i32, %arg2: i32, %arg3: memref<256x256xf32, #tpu.memory_space<vmem>>, %arg4: memref<256x256xf32, #tpu.memory_space<vmem>>, %arg5: memref<1x256xf32, #tpu.memory_space<vmem>>, %arg6: memref<256x256xf32, #tpu.memory_space<vmem>>, %arg7: memref<256x256xf32, #tpu.memory_space<vmem>>) attributes {dimension_semantics = [#tpu.dimension_semantics<parallel>, #tpu.dimension_semantics<parallel>, #tpu.dimension_semantics<arbitrary>], iteration_bounds = array<i64: 2, 1, 2>, scalar_prefetch = 0 : i64, scratch_operands = 1 : i64, tpu.core_type = #tpu.core_type<tc>, window_params = [{transform_indices = @transform_0, window_bounds = array<i64: 256, 256>}, {transform_indices = @transform_1, window_bounds = array<i64: 256, 256>}, {transform_indices = @transform_2, window_bounds = array<i64: 1, 256>}, {transform_indices = @transform_3, window_bounds = array<i64: 256, 256>}]} {
    %c0_i32 = arith.constant 0 : i32
    %0 = arith.cmpi eq, %arg2, %c0_i32 : i32
    %1 = arith.extui %0 : i1 to i32
    %c0_i32_0 = arith.constant 0 : i32
    %2 = arith.cmpi ne, %1, %c0_i32_0 : i32
    scf.if %2 {
      %cst_9 = arith.constant 0.000000e+00 : f32
      %12 = vector.broadcast %cst_9 : f32 to vector<256x256xf32>
      %c0_10 = arith.constant 0 : index
      %c0_11 = arith.constant 0 : index
      %13 = vector.load %arg7[%c0_10, %c0_11] : memref<256x256xf32, #tpu.memory_space<vmem>>, vector<256x256xf32>
      tpu.vector_store %arg7[%c0_10, %c0_11], %12 {strides = array<i32>} : memref<256x256xf32, #tpu.memory_space<vmem>>, vector<256x256xf32>,
    } else {
    }
    %c0 = arith.constant 0 : index
    %c0_1 = arith.constant 0 : index
    %3 = vector.load %arg3[%c0, %c0_1] : memref<256x256xf32, #tpu.memory_space<vmem>>, vector<256x256xf32>
    %c0_2 = arith.constant 0 : index
    %c0_3 = arith.constant 0 : index
    %4 = vector.load %arg4[%c0_2, %c0_3] : memref<256x256xf32, #tpu.memory_space<vmem>>, vector<256x256xf32>
    %c0_4 = arith.constant 0 : index
    %c0_5 = arith.constant 0 : index
    %5 = vector.load %arg7[%c0_4, %c0_5] : memref<256x256xf32, #tpu.memory_space<vmem>>, vector<256x256xf32>
    %cst = arith.constant dense<0.000000e+00> : vector<256x256xf32>
    %6 = tpu.matmul %3, %4, %cst {dimension_numbers = #tpu.dot_dimension_numbers<[1], [0], [0], [1], [0, 0, 1, 1], [], []>} : vector<256x256xf32>, vector<256x256xf32>, vector<256x256xf32> -> vector<256x256xf32>
    %7 = arith.addf %5, %6 : vector<256x256xf32>
    %c0_6 = arith.constant 0 : index
    %c0_7 = arith.constant 0 : index
    %8 = vector.load %arg7[%c0_6, %c0_7] : memref<256x256xf32, #tpu.memory_space<vmem>>, vector<256x256xf32>
    tpu.vector_store %arg7[%c0_6, %c0_7], %7 {strides = array<i32>} : memref<256x256xf32, #tpu.memory_space<vmem>>, vector<256x256xf32>,
    %c1_i32 = arith.constant 1 : i32
    %9 = arith.cmpi eq, %arg2, %c1_i32 : i32
    %10 = arith.extui %9 : i1 to i32
    %c0_i32_8 = arith.constant 0 : i32
    %11 = arith.cmpi ne, %10, %c0_i32_8 : i32
    scf.if %11 {
      %c0_9 = arith.constant 0 : index
      %c0_10 = arith.constant 0 : index
      %12 = vector.load %arg7[%c0_9, %c0_10] : memref<256x256xf32, #tpu.memory_space<vmem>>, vector<256x256xf32>
      %c0_11 = arith.constant 0 : index
      %c0_12 = arith.constant 0 : index
      %13 = vector.load %arg5[%c0_11, %c0_12] : memref<1x256xf32, #tpu.memory_space<vmem>>, vector<1x256xf32>
      %14 = vector.broadcast %13 : vector<1x256xf32> to vector<256x256xf32>
      %15 = arith.addf %12, %14 : vector<256x256xf32>
      %cst_13 = arith.constant 0.000000e+00 : f32
      %16 = vector.broadcast %cst_13 : f32 to vector<256x256xf32>
      %17 = arith.maximumf %15, %16 : vector<256x256xf32>
      %c0_14 = arith.constant 0 : index
      %c0_15 = arith.constant 0 : index
      %18 = vector.load %arg6[%c0_14, %c0_15] : memref<256x256xf32, #tpu.memory_space<vmem>>, vector<256x256xf32>
      tpu.vector_store %arg6[%c0_14, %c0_15], %17 {strides = array<i32>} : memref<256x256xf32, #tpu.memory_space<vmem>>, vector<256x256xf32>,
    } else {
    }
    return
  }
  func.func @transform_0(%arg0: i32, %arg1: i32, %arg2: i32) -> (i32, i32) {
    %c0_i32 = arith.constant 0 : i32
    return %arg0, %arg2 : i32, i32
  }
  func.func @transform_1(%arg0: i32, %arg1: i32, %arg2: i32) -> (i32, i32) {
    %c0_i32 = arith.constant 0 : i32
    return %arg2, %arg1 : i32, i32
  }
  func.func @transform_2(%arg0: i32, %arg1: i32, %arg2: i32) -> (i32, i32) {
    %c0_i32 = arith.constant 0 : i32
    %c0_i32_0 = arith.constant 0 : i32
    return %c0_i32, %arg1 : i32, i32
  }
  func.func @transform_3(%arg0: i32, %arg1: i32, %arg2: i32) -> (i32, i32) {
    %c0_i32 = arith.constant 0 : i32
    return %arg0, %arg1 : i32, i32
  }
}

</mosaic_0001>

<bundles_post_ra>
// kernel: tpu_custom_call.1
= control target key start
LH: loop header
LB: loop body
LE: loop exit
PB: predicated region body
PF: predicated region fallthrough
CT: control target
= control target key end

     0   :  { %s2540_s0 = inlined_call_operand.hbm [shape: f32[512,512], index: 0, kind: input, shape index: {}]   ;;  %s2541_s1 = inlined_call_operand.hbm [shape: f32[512,256], index: 1, kind: input, shape index: {}]   ;;  %s2542_s2 = inlined_call_operand.vmem [shape: f32[1,256], index: 2, kind: input, shape index: {}]   ;;  %s2543_s3 = inlined_call_operand.hbm [shape: f32[512,256], index: 3, kind: output, shape index: {}]  }
   0x1   :  { %2554 = sst [smem:[#allocation16_spill]] %s2542_s2 }
   0x2   :  { %2555 = sst [smem:[#allocation17_spill]] %s2543_s3 }
   0x3   :  { %8 = vsyncpa [#allocation4], 0 }
   0x4   :  { %10 = vsyncpa [#allocation4 + $0x1], 0 }
   0x5   :  { %11 = vsyncpa [#allocation7], 0 }
   0x6   :  { %13 = vsyncpa [#allocation7 + $0x1], 0 }
   0x7   :  { %14 = vsyncpa [#allocation5], 0 }
   0x8   :  { %16 = vsyncpa [#allocation5 + $0x1], 0  ;;  %s1855_s12 = smov 0   ;;  %s1857_s13 = smov 0  }
   0x9   :  { %s1859_s14 = smov 0   ;;  %s1861_s15 = smov 0  }
   0xa   :  { %s1863_s16 = smov 0   ;;  %s1865_s17 = smov 0  }
   0xb   :  { %s1867_s18 = smov 0   ;;  %s1869_s19 = smov 0  }
   0xc   :  { %s1871_s20 = smov 0   ;;  %s1873_s21 = smov 0  }
   0xd   :  { %s1875_s22 = smov 0   ;;  %s1877_s23 = smov 0  }
   0xe   :  { %s1879_s24 = smov 0   ;;  %s1881_s25 = smov 0  }
   0xf LB: > { %2556 = sst [smem:[#allocation12_spill]] %s1808_s21  ;;  %s34_s26 = sadd.s32 1, %s1816_s23  ;;  %s1824_s25 = sphi %s1881_s25, %s22_s25   ;;  %s1820_s24 = sphi %s1879_s24, %s2599_s24   ;;  %s1816_s23 = sphi %s1877_s23, %s2598_s23   ;;  %s1812_s22 = sphi %s1875_s22, %s2597_s22   ;;  %s1808_s21 = sphi %s1873_s21, %s2596_s21   ;;  %s1804_s20 = sphi %s1871_s20, %s2595_s20   ;;  %s1800_s19 = sphi %s1869_s19, %s2594_s19   ;;  %s1796_s18 = sphi %s1867_s18, %s2593_s18   ;;  %s1792_s17 = sphi %s1865_s17, %s2592_s17   ;;  %s1788_s16 = sphi %s1863_s16, %s2591_s16   ;;  %s1784_s15 = sphi %s1861_s15, %s2590_s15   ;;  %s1780_s14 = sphi %s1859_s14, %s2589_s14   ;;  %s1776_s13 = sphi %s1857_s13, %s2588_s13   ;;  %s1772_s12 = sphi %s1855_s12, %s2587_s12  }
  0x10   : > { %2557 = sst [smem:[#allocation13_spill]] %s1812_s22  ;;  %s41_s27 = sadd.s32 1, %s1820_s24 }
  0x11   : > { %p35_p0 = scmp.ge.s32.totalorder %s34_s26, 2  ;;  %s50_s28 = sadd.s32 1, %s1804_s20 }
  0x12   : > { %p57_p1 = scmp.ne.s32.totalorder %s1804_s20, %s1800_s19  ;;  %p2548_p2 = scmp.eq.s32.totalorder %s1824_s25, 0 }
  0x13   : > { %s2601_s26 = smov (%p35_p0, %s34_s26), 0  ;;  %s2603_s27 = smov (!%p35_p0, %s41_s27), %s1820_s24 }
  0x14   : > { %2558 = sst [smem:[#allocation14_spill]] %s2601_s26  ;;  %s1936_s29 = ssub.s32 %s1816_s23, %s2601_s26 }
  0x15   : > { %p1940_p3 = por %p2548_p2, %p57_p1  ;;  %p43_p4 = scmp.ge.s32.totalorder %s2603_s27, 2 }
  0x16   : > { %s132_s4 = sadd.s32 1, %s1780_s14  ;;  %p2547_p6 = scmp.lt.s32.totalorder %s1824_s25, 4 }
  0x17   : > { %s2605_s27 = smov (%p43_p4, %s2603_s27), 0  ;;  %s177_s5 = sand.u32 1, %s1804_s20  }
  0x18   : > { %2560 = sst [smem:[#allocation15_spill]] %s2605_s27  ;;  %s45_s6 = ssub.s32 %s1820_s24, %s2605_s27 }
  0x19   : > { %s47_s7 = sor.u32 %s1936_s29, %s45_s6  ;;  %p130_p7 = scmp.eq.s32.totalorder %s45_s6, 0 }
  0x1a   : > { %p48_p8 = scmp.eq.s32.totalorder %s47_s7, 0  ;;  %s1355_s8 = sshll.u32 %s177_s5, 9 }
  0x1b   : > { %s1955_s9 = scalar_select %p130_p7, %s1780_s14, %s132_s4  }
  0x1c   : > { %s1958_s10 = scalar_select %p48_p8, %s1804_s20, %s50_s28  }
  0x1d   : > { %s1357_s11 = sshll.u32 %s1816_s23, 1  ;;  %s1376_s26 = sshll.u32 %s1820_s24, 7 }
  0x1e   : > { %s181_s3 = scalar_lea.vmem [#allocation3], %s1355_s8  ;;  %s188_s2 = sadd.s32 %s1376_s26, %s1357_s11 }
  0x1f   : > { %s191_s22 = sshll.u32 %s181_s3, 4  ;;  %s1359_s21 = sshll.u32 %s188_s2, 7  ;;  %s1962_s22 = int_to_ptr.vmem [resolvable:$true] %s191_s22 }
  0x20   : > { %p1968_p9 = pnand %p2547_p6, %p1940_p3  ;;  %s1975_s28 = scalar_lea.hbm %s2540_s0, %s1359_s21 }
  0x21   : > { %p1364_p10 = scmp.ge.s32.totalorder %s1824_s25, 1  ;;  %s1978_s3 = scalar_lea.sflag [#allocation4], %s177_s5 }
  0x22   : > { %s1614_s2 = scalar_lea.hbm %s1975_s28, 8192  ;;  %p1616_p12 = pneg %p1968_p9 }
  0x23   : > { %p1615_p11 = scmp.ne.s32.totalorder %s1975_s28, %s1614_s2  ;;  %s1619_s21 = scalar_lea.hbm %s2540_s0, 32768 }
  0x24   : > { %p1620_p1 = scmp.lt.u32.totalorder %s1975_s28, %s2540_s0  ;;  %p1621_p3 = scmp.lt.u32.totalorder %s1619_s21, %s1614_s2 }
  0x25   : > { %p1617_p13 = pnand %p1616_p12, %p1615_p11  ;;  %p1623_p7 = scmp.lt.u32.totalorder %s1614_s2, %s1975_s28 }
  0x26   : > { %p1622_p4 = por %p1621_p3, %p1620_p1 }
  0x27   : > { %p1618_p0 = pneg %p1617_p13 }
  0x28   : > { %p1624_p8 = por %p1623_p7, %p1622_p4 }
  0x2a   : > { %p1625_p6 = pnand %p1624_p8, %p1618_p0 }
  0x2c   : > { %1628 = shalt.err (!%p1625_p6)
}
  0x2d   : > { %s1629_s5 = scalar_lea.vmem %s1962_s22, 8192  ;;  %s1826_s11 = smov [#allocation3]  }
  0x2e   : > { %p1630_p11 = scmp.ne.s32.totalorder %s1962_s22, %s1629_s5  ;;  %s1634_s6 = sshll.u32 %s1826_s11, 4  ;;  %s1635_s6 = int_to_ptr.vmem [resolvable:$false] %s1634_s6 }
  0x2f   : > { %s1636_s7 = scalar_lea.vmem %s1635_s6, 16384  ;;  %p1637_p5 = scmp.lt.s32.totalorder %s1962_s22, %s1635_s6 }
  0x30   : > { %p1632_p13 = pnand %p1630_p11, %p1616_p12  ;;  %p1638_p1 = scmp.lt.s32.totalorder %s1636_s7, %s1629_s5 }
  0x32   : > { %p1633_p2 = pneg %p1632_p13  ;;  %p1639_p3 = por %p1638_p1, %p1637_p5 }
  0x34   : > { %p1640_p4 = pnand %p1639_p3, %p1633_p2 }
  0x36   : > { %1643 = shalt.err (!%p1640_p4)
}
  0x37   : > { %s1827_s2 = smov 512   ;;  %s2549_s26 = smov 256  }
  0x38   : > { %s2550_s30 = smov 16   ;;  %p223_p2 = scmp.lt.s32.totalorder %s1824_s25, 5 }
  0x39   : > { %1486 = dma.hbm_to_vmem [thread:$0]  (!%p1968_p9), %s1975_s28, 8192, %s1962_s22, %s1978_s3, %s1827_s2, %s2549_s26, %s2550_s30  }
  0x3a   : > { %p2011_p5 = pnand %p1364_p10, %p223_p2  ;;  %s1350_s4 = sadd.s32 4294967295, %s1824_s25  }
  0x3b   : > { %s1351_s8 = sadd.s32 4294967294, %s1824_s25   ;;  %p64_p6 = scmp.eq.s32.totalorder %s1350_s4, 0 }
  0x3c   : > { %p76_p12 = scmp.eq.s32.totalorder %s1936_s29, 0  ;;  %s78_s5 = sadd.s32 1, %s1792_s17 }
  0x3d   : > { %p85_p0 = scmp.ne.s32.totalorder %s1792_s17, %s1788_s16  ;;  %p2563_p7 = scmp.ne.s32.totalorder %s1800_s19, %s1796_s18 }
  0x3e   : > { %p91_p9 = scmp.ne.s32.totalorder %s1788_s16, %s1784_s15  ;;  %p2565_p10 = scmp.eq.s32.totalorder %s1824_s25, 0 }
  0x3f   : > { %p2024_p8 = por %p64_p6, %p2563_p7  ;;  %p142_p1 = scmp.ne.s32.totalorder %s1780_s14, %s1776_s13 }
  0x40   : > { %s2031_s22 = scalar_select %p76_p12, %s1792_s17, %s78_s5  }
  0x41   : > { %s2564_s27 = scalar_select %p2024_p8, 1, 0 }
  0x42   : > { %p2035_p11 = por %p85_p0, %p2565_p10  ;;  %p2039_p13 = por %p91_p9, %p64_p6 }
  0x43   : > { %p143_p3 = scmp.eq.s32.totalorder %s1350_s4, 3  ;;  %p148_p4 = scmp.ne.s32.totalorder %s1776_s13, %s1772_s12 }
  0x44   : > { %s2567_s29 = scalar_select %p2039_p13, 1, 0 }
  0x45   : > { %p149_p2 = scmp.eq.s32.totalorder %s1351_s8, 3  ;;  %p2047_p7 = por %p143_p3, %p142_p1 }
  0x46   : > { %s201_s15 = sand.u32 1, %s1792_s17   ;;  %s1378_s6 = sshll.u32 %s1816_s23, 13 }
  0x47   : > { %s2568_s18 = scalar_select %p2047_p7, 1, 0 }
  0x48   : > { %p2052_p12 = por %p149_p2, %p148_p4  ;;  %s1360_s11 = sshll.u32 %s201_s15, 9 }
  0x49   : > { %s2060_s5 = scalar_lea.hbm %s2541_s1, %s1378_s6  ;;  %s205_s4 = scalar_lea.vmem [#allocation6], %s1360_s11 }
  0x4a   : > { %s2569_s3 = scalar_select %p2052_p12, 1, 0 }
  0x4b   : > { %s215_s8 = sshll.u32 %s205_s4, 4  ;;  %p2570_p6 = scmp.lt.s32.totalorder %s1824_s25, 4  ;;  %s2070_s8 = int_to_ptr.vmem [resolvable:$true] %s215_s8 }
  0x4c   : > { %s2072_s30 = scalar_lea.sflag [#allocation7], %s201_s15  ;;  %s1644_s6 = scalar_lea.hbm %s2060_s5, 8192 }
  0x4d   : > { %p2066_p0 = pnand %p2570_p6, %p2035_p11  ;;  %p1645_p9 = scmp.ne.s32.totalorder %s2060_s5, %s1644_s6 }
  0x4e   : > { %s1649_s7 = scalar_lea.hbm %s2541_s1, 16384  ;;  %p1650_p11 = scmp.lt.u32.totalorder %s2060_s5, %s2541_s1 }
  0x4f   : > { %p1646_p10 = pneg %p2066_p0  ;;  %p1651_p4 = scmp.lt.u32.totalorder %s1649_s7, %s1644_s6 }
  0x50   : > { %p1653_p6 = scmp.lt.u32.totalorder %s1644_s6, %s2060_s5 }
  0x51   : > { %p1647_p1 = pnand %p1646_p10, %p1645_p9  ;;  %p1652_p2 = por %p1651_p4, %p1650_p11 }
  0x53   : > { %p1648_p3 = pneg %p1647_p1  ;;  %p1654_p12 = por %p1653_p6, %p1652_p2 }
  0x55   : > { %p1655_p7 = pnand %p1654_p12, %p1648_p3 }
  0x57   : > { %1658 = shalt.err (!%p1655_p7)
}
  0x58   : > { %s1659_s15 = scalar_lea.vmem %s2070_s8, 8192  ;;  %s1830_s28 = smov [#allocation6]  }
  0x59   : > { %p1660_p9 = scmp.ne.s32.totalorder %s2070_s8, %s1659_s15  ;;  %s1664_s11 = sshll.u32 %s1830_s28, 4  ;;  %s1665_s11 = int_to_ptr.vmem [resolvable:$false] %s1664_s11 }
  0x5a   : > { %s1666_s2 = scalar_lea.vmem %s1665_s11, 16384  ;;  %p1667_p8 = scmp.lt.s32.totalorder %s2070_s8, %s1665_s11 }
  0x5b   : > { %p1662_p1 = pnand %p1660_p9, %p1646_p10  ;;  %p1668_p11 = scmp.lt.s32.totalorder %s1666_s2, %s1659_s15 }
  0x5d   : > { %p1663_p13 = pneg %p1662_p1  ;;  %p1669_p4 = por %p1668_p11, %p1667_p8 }
  0x5f   : > { %p1670_p2 = pnand %p1669_p4, %p1663_p13 }
  0x61   : > { %1673 = shalt.err (!%p1670_p2)
}
  0x62   : > { %s2572_s6 = smov 16   ;;  %s2573_s7 = smov 256  }
  0x63   : > { %1489 = dma.hbm_to_vmem [thread:$0]  (!%p2066_p0), %s2060_s5, 8192, %s2070_s8, %s2072_s30, %s2573_s7, %s2573_s7, %s2572_s6  }
  0x64   : > { %227 = sbr.rel (%p2011_p5) target bundleno = 551 (0x227), region = 32  ;;  %s229_s4 = sand.u32 (!%p2011_p5), 1, %s1800_s19  }
  0x65   : > { %s1365_s28 = sshll.u32 (!%p2011_p5), %s229_s4, 9  ;;  %s230_s15 = scalar_lea.sflag (!%p2011_p5), [#allocation4], %s229_s4 }
  0x66   : > { %s2106_s11 = scalar_lea.vmem (!%p2011_p5), [#allocation3], %s1365_s28  ;;  %p2574_p8 = scmp.ne.s32.totalorder (!%p2011_p5), %s2564_s27, 0 }
  0x6b   : > { %1759 = dma.done.wait (%p2574_p8), %s230_s15, 8192  }
  0x6c   : > { %1761 = vsyncadd (%p2574_p8), %s230_s15, 4294959104  ;;  %s238_s26 = sand.u32 1, %s1788_s16   ;;  %p2575_p5 = scmp.ne.s32.totalorder %s2567_s29, 0 }
  0x6d   : > { %s1366_s2 = sshll.u32 %s238_s26, 9  ;;  %s239_s30 = scalar_lea.sflag [#allocation7], %s238_s26 }
  0x6e   : > { %s2113_s5 = scalar_lea.vmem [#allocation6], %s1366_s2 }
  0x6f   : > { %1763 = dma.done.wait (%p2575_p5), %s239_s30, 8192  }
  0x70   : > { %1765 = vsyncadd (%p2575_p5), %s239_s30, 4294959104  ;;  %s271_s21 = sand.u32 1, %s1776_s13   ;;  %s2576_s27 = sld [smem:[#allocation12_spill]] }
  0x71   : > { %s1367_s8 = sshll.u32 %s271_s21, 9 }
  0x72   : > { %s2122_s6 = scalar_lea.vmem [#allocation8], %s1367_s8 }
  0x76   : > { %p1368_p13 = scmp.ne.s32.totalorder %s2576_s27, 0 }
  0x77   : > { %v1831_v0 = vmov (!%p1368_p13), 0.0  }
  0x78   : > { %288 = sbr.rel (%p1368_p13) target bundleno = 152 (0x98), region = 44  ;;  %289 = vst [vmem:[#allocation2] sm:$0xff] (!%p1368_p13), %v1831_v0  ;;  %290 = vst [vmem:[#allocation2 + $0x8] sm:$0xff] (!%p1368_p13), %v1831_v0 }
  0x79   : > { %291 = vst [vmem:[#allocation2 + $0x10] sm:$0xff] (!%p1368_p13), %v1831_v0  ;;  %292 = vst [vmem:[#allocation2 + $0x18] sm:$0xff] (!%p1368_p13), %v1831_v0 }
  0x7a   : > { %293 = vst [vmem:[#allocation2 + $0x20] sm:$0xff] (!%p1368_p13), %v1831_v0  ;;  %294 = vst [vmem:[#allocation2 + $0x28] sm:$0xff] (!%p1368_p13), %v1831_v0 }
  0x7b   : > { %295 = vst [vmem:[#allocation2 + $0x30] sm:$0xff] (!%p1368_p13), %v1831_v0  ;;  %296 = vst [vmem:[#allocation2 + $0x38] sm:$0xff] (!%p1368_p13), %v1831_v0 }
  0x7c   : > { %297 = vst [vmem:[#allocation2 + $0x40] sm:$0xff] (!%p1368_p13), %v1831_v0  ;;  %298 = vst [vmem:[#allocation2 + $0x48] sm:$0xff] (!%p1368_p13), %v1831_v0 }
  0x7d   : > { %299 = vst [vmem:[#allocation2 + $0x50] sm:$0xff] (!%p1368_p13), %v1831_v0  ;;  %300 = vst [vmem:[#allocation2 + $0x58] sm:$0xff] (!%p1368_p13), %v1831_v0 }
  0x7e   : > { %301 = vst [vmem:[#allocation2 + $0x60] sm:$0xff] (!%p1368_p13), %v1831_v0  ;;  %302 = vst [vmem:[#allocation2 + $0x68] sm:$0xff] (!%p1368_p13), %v1831_v0 }
  0x7f   : > { %303 = vst [vmem:[#allocation2 + $0x70] sm:$0xff] %v1831_v0  ;;  %304 = vst [vmem:[#allocation2 + $0x78] sm:$0xff] %v1831_v0 }
  0x80   : > { %305 = vst [vmem:[#allocation2 + $0x80] sm:$0xff] %v1831_v0  ;;  %306 = vst [vmem:[#allocation2 + $0x88] sm:$0xff] %v1831_v0 }
  0x81   : > { %307 = vst [vmem:[#allocation2 + $0x90] sm:$0xff] %v1831_v0  ;;  %308 = vst [vmem:[#allocation2 + $0x98] sm:$0xff] %v1831_v0 }
  0x82   : > { %309 = vst [vmem:[#allocation2 + $0xa0] sm:$0xff] %v1831_v0  ;;  %310 = vst [vmem:[#allocation2 + $0xa8] sm:$0xff] %v1831_v0 }
  0x83   : > { %311 = vst [vmem:[#allocation2 + $0xb0] sm:$0xff] %v1831_v0  ;;  %312 = vst [vmem:[#allocation2 + $0xb8] sm:$0xff] %v1831_v0 }
  0x84   : > { %313 = vst [vmem:[#allocation2 + $0xc0] sm:$0xff] %v1831_v0  ;;  %314 = vst [vmem:[#allocation2 + $0xc8] sm:$0xff] %v1831_v0 }
  0x85   : > { %315 = vst [vmem:[#allocation2 + $0xd0] sm:$0xff] %v1831_v0  ;;  %316 = vst [vmem:[#allocation2 + $0xd8] sm:$0xff] %v1831_v0 }
  0x86   : > { %317 = vst [vmem:[#allocation2 + $0xe0] sm:$0xff] %v1831_v0  ;;  %318 = vst [vmem:[#allocation2 + $0xe8] sm:$0xff] %v1831_v0 }
  0x87   : > { %319 = vst [vmem:[#allocation2 + $0xf0] sm:$0xff] %v1831_v0  ;;  %320 = vst [vmem:[#allocation2 + $0xf8] sm:$0xff] %v1831_v0 }
  0x88   : > { %321 = vst [vmem:[#allocation2 + $0x100] sm:$0xff] %v1831_v0  ;;  %322 = vst [vmem:[#allocation2 + $0x108] sm:$0xff] %v1831_v0 }
  0x89   : > { %323 = vst [vmem:[#allocation2 + $0x110] sm:$0xff] %v1831_v0  ;;  %324 = vst [vmem:[#allocation2 + $0x118] sm:$0xff] %v1831_v0 }
  0x8a   : > { %325 = vst [vmem:[#allocation2 + $0x120] sm:$0xff] %v1831_v0  ;;  %326 = vst [vmem:[#allocation2 + $0x128] sm:$0xff] %v1831_v0 }
  0x8b   : > { %327 = vst [vmem:[#allocation2 + $0x130] sm:$0xff] %v1831_v0  ;;  %328 = vst [vmem:[#allocation2 + $0x138] sm:$0xff] %v1831_v0 }
  0x8c   : > { %329 = vst [vmem:[#allocation2 + $0x140] sm:$0xff] %v1831_v0  ;;  %330 = vst [vmem:[#allocation2 + $0x148] sm:$0xff] %v1831_v0 }
  0x8d   : > { %331 = vst [vmem:[#allocation2 + $0x150] sm:$0xff] %v1831_v0  ;;  %332 = vst [vmem:[#allocation2 + $0x158] sm:$0xff] %v1831_v0 }
  0x8e   : > { %333 = vst [vmem:[#allocation2 + $0x160] sm:$0xff] %v1831_v0  ;;  %334 = vst [vmem:[#allocation2 + $0x168] sm:$0xff] %v1831_v0 }
  0x8f   : > { %335 = vst [vmem:[#allocation2 + $0x170] sm:$0xff] %v1831_v0  ;;  %336 = vst [vmem:[#allocation2 + $0x178] sm:$0xff] %v1831_v0 }
  0x90   : > { %337 = vst [vmem:[#allocation2 + $0x180] sm:$0xff] %v1831_v0  ;;  %338 = vst [vmem:[#allocation2 + $0x188] sm:$0xff] %v1831_v0 }
  0x91   : > { %339 = vst [vmem:[#allocation2 + $0x190] sm:$0xff] %v1831_v0  ;;  %340 = vst [vmem:[#allocation2 + $0x198] sm:$0xff] %v1831_v0 }
  0x92   : > { %341 = vst [vmem:[#allocation2 + $0x1a0] sm:$0xff] %v1831_v0  ;;  %342 = vst [vmem:[#allocation2 + $0x1a8] sm:$0xff] %v1831_v0 }
  0x93   : > { %343 = vst [vmem:[#allocation2 + $0x1b0] sm:$0xff] %v1831_v0  ;;  %344 = vst [vmem:[#allocation2 + $0x1b8] sm:$0xff] %v1831_v0 }
  0x94   : > { %345 = vst [vmem:[#allocation2 + $0x1c0] sm:$0xff] %v1831_v0  ;;  %346 = vst [vmem:[#allocation2 + $0x1c8] sm:$0xff] %v1831_v0 }
  0x95   : > { %347 = vst [vmem:[#allocation2 + $0x1d0] sm:$0xff] %v1831_v0  ;;  %348 = vst [vmem:[#allocation2 + $0x1d8] sm:$0xff] %v1831_v0 }
  0x96   : > { %349 = vst [vmem:[#allocation2 + $0x1e0] sm:$0xff] %v1831_v0  ;;  %350 = vst [vmem:[#allocation2 + $0x1e8] sm:$0xff] %v1831_v0 }
  0x97   : > { %351 = vst [vmem:[#allocation2 + $0x1f0] sm:$0xff] %v1831_v0  ;;  %352 = vst [vmem:[#allocation2 + $0x1f8] sm:$0xff] %v1831_v0 }
  0x98 PF: > { %v418_v1 = vld [vmem:[%s2113_s5 + $0x8] sm:$0xff]  ;;  %v420_v2 = vld [vmem:[%s2113_s5 + $0x18] sm:$0xff]  ;;  %v417_v3 = vld [vmem:[%s2113_s5] sm:$0xff]  ;;  %s2577_s29 = sld [smem:[#allocation12_spill]] }
  0x99   : > { %v1381_v4 = vpack.c.bf16 %v420_v2, %v418_v1  ;;  %v419_v5 = vld [vmem:[%s2113_s5 + $0x10] sm:$0xff]  ;;  %v422_v6 = vld [vmem:[%s2113_s5 + $0x28] sm:$0xff]  ;;  %v424_v7 = vld [vmem:[%s2113_s5 + $0x38] sm:$0xff] }
  0x9a   : > { %v1383_v8 = vpack.c.bf16 %v419_v5, %v417_v3  ;;  %v1385_v9 = vpack.c.bf16 %v424_v7, %v422_v6  ;;  %v421_v10 = vld [vmem:[%s2113_s5 + $0x20] sm:$0xff]  ;;  %v423_v11 = vld [vmem:[%s2113_s5 + $0x30] sm:$0xff]  ;;  %v426_v12 = vld [vmem:[%s2113_s5 + $0x48] sm:$0xff] }
  0x9b   : > { %1382 = vmatprep.subr.bf16.mxu0 %v1381_v4  ;;  %1445 = vmatprep.subr.bf16.mxu1 %v1381_v4  ;;  %v428_v13 = vld [vmem:[%s2113_s5 + $0x58] sm:$0xff]  ;;  %v1387_v14 = vpack.c.bf16 %v423_v11, %v421_v10  ;;  %v425_v16 = vld [vmem:[%s2113_s5 + $0x40] sm:$0xff]  ;;  %v427_v17 = vld [vmem:[%s2113_s5 + $0x50] sm:$0xff] }
  0x9c   : > { %1384 = vmatpush1.bf16.msra.mxu0 %v1383_v8  ;;  %1461 = vmatpush1.bf16.msra.mxu1 %v1383_v8  ;;  %v1389_v15 = vpack.c.bf16 %v428_v13, %v426_v12  ;;  %v430_v18 = vld [vmem:[%s2113_s5 + $0x68] sm:$0xff]  ;;  %v432_v19 = vld [vmem:[%s2113_s5 + $0x78] sm:$0xff]  ;;  %v1391_v20 = vpack.c.bf16 %v427_v17, %v425_v16  ;;  %v429_v22 = vld [vmem:[%s2113_s5 + $0x60] sm:$0xff] }
  0x9d   : > { %1386 = vmatprep.subr.bf16.mxu0 %v1385_v9  ;;  %1446 = vmatprep.subr.bf16.mxu1 %v1385_v9  ;;  %v1393_v21 = vpack.c.bf16 %v432_v19, %v430_v18  ;;  %v431_v23 = vld [vmem:[%s2113_s5 + $0x70] sm:$0xff]  ;;  %v434_v24 = vld [vmem:[%s2113_s5 + $0x88] sm:$0xff]  ;;  %v436_v25 = vld [vmem:[%s2113_s5 + $0x98] sm:$0xff] }
  0x9e   : > { %v1395_v26 = vpack.c.bf16 %v431_v23, %v429_v22  ;;  %v1397_v27 = vpack.c.bf16 %v436_v25, %v434_v24  ;;  %v433_v28 = vld [vmem:[%s2113_s5 + $0x80] sm:$0xff]  ;;  %v435_v29 = vld [vmem:[%s2113_s5 + $0x90] sm:$0xff]  ;;  %v438_v30 = vld [vmem:[%s2113_s5 + $0xa8] sm:$0xff]  ;;  %p1369_p7 = scmp.ne.s32.totalorder %s2577_s29, 1 }
  0x9f   : > { %v440_v31 = vld [vmem:[%s2113_s5 + $0xb8] sm:$0xff]  ;;  %v1399_v32 = vpack.c.bf16 %v435_v29, %v433_v28  ;;  %v437_v34 = vld [vmem:[%s2113_s5 + $0xa0] sm:$0xff]  ;;  %v439_v35 = vld [vmem:[%s2113_s5 + $0xb0] sm:$0xff]  ;;  %s2578_s28 = sld [smem:[#allocation16_spill]] (!%p1369_p7) }
  0xa0   : > { %1388 = vmatpush1.bf16.msra.mxu0 %v1387_v14  ;;  %1462 = vmatpush1.bf16.msra.mxu1 %v1387_v14  ;;  %v1401_v33 = vpack.c.bf16 %v440_v31, %v438_v30  ;;  %v442_v36 = vld [vmem:[%s2113_s5 + $0xc8] sm:$0xff]  ;;  %v444_v37 = vld [vmem:[%s2113_s5 + $0xd8] sm:$0xff]  ;;  %v1403_v38 = vpack.c.bf16 %v439_v35, %v437_v34  ;;  %v441_v39 = vld [vmem:[%s2113_s5 + $0xc0] sm:$0xff] }
  0xa1   : > { %1390 = vmatprep.subr.bf16.mxu0 %v1389_v15  ;;  %1447 = vmatprep.subr.bf16.mxu1 %v1389_v15  ;;  %v1405_v40 = vpack.c.bf16 %v444_v37, %v442_v36  ;;  %v443_v41 = vld [vmem:[%s2113_s5 + $0xd0] sm:$0xff]  ;;  %v354_v42 = vld [vmem:[%s2106_s11 + $0x8] sm:$0xff]  ;;  %v448_v45 = vld [vmem:[%s2113_s5 + $0xf8] sm:$0xff] }
  0xa2   : > { %v386_v43 = vld [vmem:[%s2106_s11 + $0x108] sm:$0xff]  ;;  %609 = vmatprep.mubr.f32.mxu0 %v354_v42  ;;  %v1407_v46 = vpack.c.bf16 %v443_v41, %v441_v39  ;;  %v445_v48 = vld [vmem:[%s2113_s5 + $0xe0] sm:$0xff]  ;;  %v447_v49 = vld [vmem:[%s2113_s5 + $0xf0] sm:$0xff] }
  0xa3   : > { %v446_v44 = vld [vmem:[%s2113_s5 + $0xe8] sm:$0xff]  ;;  %705 = vmatprep.mubr.f32.mxu1 %v386_v43  ;;  %v452_v51 = vld [vmem:[%s2113_s5 + $0x118] sm:$0xff]  ;;  %v1411_v52 = vpack.c.bf16 %v447_v49, %v445_v48  ;;  %v449_v54 = vld [vmem:[%s2113_s5 + $0x100] sm:$0xff] }
  0xa4   : > { %1392 = vmatpush1.bf16.msra.mxu0 %v1391_v20  ;;  %1463 = vmatpush1.bf16.msra.mxu1 %v1391_v20  ;;  %v1409_v47 = vpack.c.bf16 %v448_v45, %v446_v44  ;;  %v450_v50 = vld [vmem:[%s2113_s5 + $0x108] sm:$0xff]  ;;  %v451_v55 = vld [vmem:[%s2113_s5 + $0x110] sm:$0xff]  ;;  %v456_v57 = vld [vmem:[%s2113_s5 + $0x138] sm:$0xff] }
  0xa5   : > { %1394 = vmatprep.subr.bf16.mxu0 %v1393_v21  ;;  %1448 = vmatprep.subr.bf16.mxu1 %v1393_v21  ;;  %v1413_v53 = vpack.c.bf16 %v452_v51, %v450_v50  ;;  %v454_v56 = vld [vmem:[%s2113_s5 + $0x128] sm:$0xff]  ;;  %v1415_v58 = vpack.c.bf16 %v451_v55, %v449_v54  ;;  %v453_v60 = vld [vmem:[%s2113_s5 + $0x120] sm:$0xff]  ;;  %v455_v61 = vld [vmem:[%s2113_s5 + $0x130] sm:$0xff] }
  0xa6   : > { %v1417_v59 = vpack.c.bf16 %v456_v57, %v454_v56  ;;  %v458_v62 = vld [vmem:[%s2113_s5 + $0x148] sm:$0xff]  ;;  %v460_v63 = vld [vmem:[%s2113_s5 + $0x158] sm:$0xff]  ;;  %v1419_v0 = vpack.c.bf16 %v455_v61, %v453_v60  ;;  %v457_v2 = vld [vmem:[%s2113_s5 + $0x140] sm:$0xff] }
  0xa7   : > { %v1421_v1 = vpack.c.bf16 %v460_v63, %v458_v62  ;;  %v459_v3 = vld [vmem:[%s2113_s5 + $0x150] sm:$0xff]  ;;  %v462_v4 = vld [vmem:[%s2113_s5 + $0x168] sm:$0xff]  ;;  %v464_v5 = vld [vmem:[%s2113_s5 + $0x178] sm:$0xff] }
  0xa8   : > { %1396 = vmatpush1.bf16.msra.mxu0 %v1395_v26  ;;  %1464 = vmatpush1.bf16.msra.mxu1 %v1395_v26  ;;  %v1423_v6 = vpack.c.bf16 %v459_v3, %v457_v2  ;;  %v1425_v7 = vpack.c.bf16 %v464_v5, %v462_v4  ;;  %v461_v8 = vld [vmem:[%s2113_s5 + $0x160] sm:$0xff]  ;;  %v463_v9 = vld [vmem:[%s2113_s5 + $0x170] sm:$0xff]  ;;  %v466_v10 = vld [vmem:[%s2113_s5 + $0x188] sm:$0xff] }
  0xa9   : > { %1398 = vmatprep.subr.bf16.mxu0 %v1397_v27  ;;  %1449 = vmatprep.subr.bf16.mxu1 %v1397_v27  ;;  %v468_v11 = vld [vmem:[%s2113_s5 + $0x198] sm:$0xff]  ;;  %v1427_v12 = vpack.c.bf16 %v463_v9, %v461_v8  ;;  %v465_v14 = vld [vmem:[%s2113_s5 + $0x180] sm:$0xff]  ;;  %v467_v15 = vld [vmem:[%s2113_s5 + $0x190] sm:$0xff] }
  0xaa   : > { %v1429_v13 = vpack.c.bf16 %v468_v11, %v466_v10  ;;  %v470_v16 = vld [vmem:[%s2113_s5 + $0x1a8] sm:$0xff]  ;;  %v472_v17 = vld [vmem:[%s2113_s5 + $0x1b8] sm:$0xff]  ;;  %v1431_v18 = vpack.c.bf16 %v467_v15, %v465_v14  ;;  %v469_v20 = vld [vmem:[%s2113_s5 + $0x1a0] sm:$0xff] }
  0xab   : > { %v1433_v19 = vpack.c.bf16 %v472_v17, %v470_v16  ;;  %v471_v21 = vld [vmem:[%s2113_s5 + $0x1b0] sm:$0xff]  ;;  %v474_v22 = vld [vmem:[%s2113_s5 + $0x1c8] sm:$0xff]  ;;  %v476_v23 = vld [vmem:[%s2113_s5 + $0x1d8] sm:$0xff] }
  0xac   : > { %1400 = vmatpush1.bf16.msra.mxu0 %v1399_v32  ;;  %1465 = vmatpush1.bf16.msra.mxu1 %v1399_v32  ;;  %v1435_v24 = vpack.c.bf16 %v471_v21, %v469_v20  ;;  %v1437_v25 = vpack.c.bf16 %v476_v23, %v474_v22  ;;  %v473_v26 = vld [vmem:[%s2113_s5 + $0x1c0] sm:$0xff]  ;;  %v475_v27 = vld [vmem:[%s2113_s5 + $0x1d0] sm:$0xff]  ;;  %v478_v28 = vld [vmem:[%s2113_s5 + $0x1e8] sm:$0xff] }
  0xad   : > { %1402 = vmatprep.subr.bf16.mxu0 %v1401_v33  ;;  %1450 = vmatprep.subr.bf16.mxu1 %v1401_v33  ;;  %v480_v29 = vld [vmem:[%s2113_s5 + $0x1f8] sm:$0xff]  ;;  %v1439_v30 = vpack.c.bf16 %v475_v27, %v473_v26  ;;  %v477_v32 = vld [vmem:[%s2113_s5 + $0x1e0] sm:$0xff]  ;;  %v479_v33 = vld [vmem:[%s2113_s5 + $0x1f0] sm:$0xff] }
  0xae   : > { %v1441_v31 = vpack.c.bf16 %v480_v29, %v478_v28  ;;  %v1443_v34 = vpack.c.bf16 %v479_v33, %v477_v32  ;;  %v353_v35 = vld [vmem:[%s2106_s11] sm:$0xff]  ;;  %v356_v37 = vld [vmem:[%s2106_s11 + $0x18] sm:$0xff]  ;;  %v355_v39 = vld [vmem:[%s2106_s11 + $0x10] sm:$0xff] }
  0xaf   : > { %v385_v36 = vld [vmem:[%s2106_s11 + $0x100] sm:$0xff]  ;;  %v358_v41 = vld [vmem:[%s2106_s11 + $0x28] sm:$0xff]  ;;  %v360_v45 = vld [vmem:[%s2106_s11 + $0x38] sm:$0xff] }
  0xb0   : > { %1404 = vmatpush1.bf16.msra.mxu0 %v1403_v38  ;;  %1466 = vmatpush1.bf16.msra.mxu1 %v1403_v38  ;;  %v388_v38 = vld [vmem:[%s2106_s11 + $0x118] sm:$0xff]  ;;  %v390_v42 = vld [vmem:[%s2106_s11 + $0x128] sm:$0xff]  ;;  %v357_v43 = vld [vmem:[%s2106_s11 + $0x20] sm:$0xff] }
  0xb1   : > { %1406 = vmatprep.subr.bf16.mxu0 %v1405_v40  ;;  %1451 = vmatprep.subr.bf16.mxu1 %v1405_v40  ;;  %v387_v40 = vld [vmem:[%s2106_s11 + $0x110] sm:$0xff]  ;;  %v389_v44 = vld [vmem:[%s2106_s11 + $0x120] sm:$0xff]  ;;  %v362_v49 = vld [vmem:[%s2106_s11 + $0x48] sm:$0xff] }
  0xb2   : > { %v391_v48 = vld [vmem:[%s2106_s11 + $0x130] sm:$0xff]  ;;  %v394_v50 = vld [vmem:[%s2106_s11 + $0x148] sm:$0xff]  ;;  %v361_v51 = vld [vmem:[%s2106_s11 + $0x40] sm:$0xff] }
  0xb3   : > { %v396_v54 = vld [vmem:[%s2106_s11 + $0x158] sm:$0xff]  ;;  %v363_v55 = vld [vmem:[%s2106_s11 + $0x50] sm:$0xff]  ;;  %v366_v57 = vld [vmem:[%s2106_s11 + $0x68] sm:$0xff] }
  0xb4   : > { %1408 = vmatpush1.bf16.msra.mxu0 %v1407_v46  ;;  %1467 = vmatpush1.bf16.msra.mxu1 %v1407_v46  ;;  %v392_v46 = vld [vmem:[%s2106_s11 + $0x138] sm:$0xff]  ;;  %v395_v56 = vld [vmem:[%s2106_s11 + $0x150] sm:$0xff]  ;;  %v397_v60 = vld [vmem:[%s2106_s11 + $0x160] sm:$0xff] }
  0xb5   : > { %1410 = vmatprep.subr.bf16.mxu0 %v1409_v47  ;;  %1452 = vmatprep.subr.bf16.mxu1 %v1409_v47  ;;  %v359_v47 = vld [vmem:[%s2106_s11 + $0x30] sm:$0xff]  ;;  %v368_v61 = vld [vmem:[%s2106_s11 + $0x78] sm:$0xff]  ;;  %v402_v2 = vld [vmem:[%s2106_s11 + $0x188] sm:$0xff] }
  0xb6   : > { %v400_v62 = vld [vmem:[%s2106_s11 + $0x178] sm:$0xff]  ;;  %v367_v63 = vld [vmem:[%s2106_s11 + $0x70] sm:$0xff]  ;;  %v369_v3 = vld [vmem:[%s2106_s11 + $0x80] sm:$0xff] }
  0xb7   : > { %v401_v4 = vld [vmem:[%s2106_s11 + $0x180] sm:$0xff]  ;;  %v372_v5 = vld [vmem:[%s2106_s11 + $0x98] sm:$0xff]  ;;  %v403_v8 = vld [vmem:[%s2106_s11 + $0x190] sm:$0xff] }
  0xb8   : > { %1412 = vmatpush1.bf16.msra.mxu0 %v1411_v52  ;;  %1468 = vmatpush1.bf16.msra.mxu1 %v1411_v52  ;;  %v393_v52 = vld [vmem:[%s2106_s11 + $0x140] sm:$0xff]  ;;  %v374_v9 = vld [vmem:[%s2106_s11 + $0xa8] sm:$0xff]  ;;  %v408_v14 = vld [vmem:[%s2106_s11 + $0x1b8] sm:$0xff] }
  0xb9   : > { %1414 = vmatprep.subr.bf16.mxu0 %v1413_v53  ;;  %1453 = vmatprep.subr.bf16.mxu1 %v1413_v53  ;;  %v364_v53 = vld [vmem:[%s2106_s11 + $0x58] sm:$0xff]  ;;  %v406_v10 = vld [vmem:[%s2106_s11 + $0x1a8] sm:$0xff]  ;;  %v373_v11 = vld [vmem:[%s2106_s11 + $0xa0] sm:$0xff] }
  0xba   : > { %v375_v15 = vld [vmem:[%s2106_s11 + $0xb0] sm:$0xff]  ;;  %v378_v17 = vld [vmem:[%s2106_s11 + $0xc8] sm:$0xff]  ;;  %v409_v20 = vld [vmem:[%s2106_s11 + $0x1c0] sm:$0xff] }
  0xbb   : > { %v407_v16 = vld [vmem:[%s2106_s11 + $0x1b0] sm:$0xff]  ;;  %v380_v21 = vld [vmem:[%s2106_s11 + $0xd8] sm:$0xff]  ;;  %v414_v26 = vld [vmem:[%s2106_s11 + $0x1e8] sm:$0xff] }
  0xbc   : > { %1416 = vmatpush1.bf16.msra.mxu0 %v1415_v58  ;;  %1469 = vmatpush1.bf16.msra.mxu1 %v1415_v58  ;;  %v398_v58 = vld [vmem:[%s2106_s11 + $0x168] sm:$0xff]  ;;  %v412_v22 = vld [vmem:[%s2106_s11 + $0x1d8] sm:$0xff]  ;;  %v379_v23 = vld [vmem:[%s2106_s11 + $0xd0] sm:$0xff] }
  0xbd   : > { %1418 = vmatprep.subr.bf16.mxu0 %v1417_v59  ;;  %1454 = vmatprep.subr.bf16.mxu1 %v1417_v59  ;;  %v365_v59 = vld [vmem:[%s2106_s11 + $0x60] sm:$0xff]  ;;  %v384_v29 = vld [vmem:[%s2106_s11 + $0xf8] sm:$0xff]  ;;  %v415_v32 = vld [vmem:[%s2106_s11 + $0x1f0] sm:$0xff] }
  0xbe   : > { %v381_v27 = vld [vmem:[%s2106_s11 + $0xe0] sm:$0xff] }
  0xbf   : > { %v413_v28 = vld [vmem:[%s2106_s11 + $0x1e0] sm:$0xff] }
  0xc0   : > { %1420 = vmatpush1.bf16.msra.mxu0 %v1419_v0  ;;  %1470 = vmatpush1.bf16.msra.mxu1 %v1419_v0  ;;  %v399_v0 = vld [vmem:[%s2106_s11 + $0x170] sm:$0xff]  ;;  %v481_v33 = vld [vmem:[#allocation2] sm:$0xff] }
  0xc1   : > { %1422 = vmatprep.subr.bf16.mxu0 %v1421_v1  ;;  %1455 = vmatprep.subr.bf16.mxu1 %v1421_v1  ;;  %v370_v1 = vld [vmem:[%s2106_s11 + $0x88] sm:$0xff] }
  0xc4   : > { %1424 = vmatpush1.bf16.msra.mxu0 %v1423_v6  ;;  %1471 = vmatpush1.bf16.msra.mxu1 %v1423_v6  ;;  %v404_v6 = vld [vmem:[%s2106_s11 + $0x198] sm:$0xff] }
  0xc5   : > { %1426 = vmatprep.subr.bf16.mxu0 %v1425_v7  ;;  %1456 = vmatprep.subr.bf16.mxu1 %v1425_v7  ;;  %v371_v7 = vld [vmem:[%s2106_s11 + $0x90] sm:$0xff] }
  0xc8   : > { %1428 = vmatpush1.bf16.msra.mxu0 %v1427_v12  ;;  %1472 = vmatpush1.bf16.msra.mxu1 %v1427_v12  ;;  %v405_v12 = vld [vmem:[%s2106_s11 + $0x1a0] sm:$0xff] }
  0xc9   : > { %1430 = vmatprep.subr.bf16.mxu0 %v1429_v13  ;;  %1457 = vmatprep.subr.bf16.mxu1 %v1429_v13  ;;  %v376_v13 = vld [vmem:[%s2106_s11 + $0xb8] sm:$0xff] }
  0xcc   : > { %1432 = vmatpush1.bf16.msra.mxu0 %v1431_v18  ;;  %1473 = vmatpush1.bf16.msra.mxu1 %v1431_v18  ;;  %v410_v18 = vld [vmem:[%s2106_s11 + $0x1c8] sm:$0xff] }
  0xcd   : > { %1434 = vmatprep.subr.bf16.mxu0 %v1433_v19  ;;  %1458 = vmatprep.subr.bf16.mxu1 %v1433_v19  ;;  %v377_v19 = vld [vmem:[%s2106_s11 + $0xc0] sm:$0xff] }
  0xd0   : > { %1436 = vmatpush1.bf16.msra.mxu0 %v1435_v24  ;;  %1474 = vmatpush1.bf16.msra.mxu1 %v1435_v24  ;;  %v411_v24 = vld [vmem:[%s2106_s11 + $0x1d0] sm:$0xff] }
  0xd1   : > { %1438 = vmatprep.subr.bf16.mxu0 %v1437_v25  ;;  %1459 = vmatprep.subr.bf16.mxu1 %v1437_v25  ;;  %v382_v25 = vld [vmem:[%s2106_s11 + $0xe8] sm:$0xff] }
  0xd4   : > { %1440 = vmatpush1.bf16.msra.mxu0 %v1439_v30  ;;  %1475 = vmatpush1.bf16.msra.mxu1 %v1439_v30  ;;  %v416_v30 = vld [vmem:[%s2106_s11 + $0x1f8] sm:$0xff] }
  0xd5   : > { %1442 = vmatprep.subr.bf16.mxu0 %v1441_v31  ;;  %1460 = vmatprep.subr.bf16.mxu1 %v1441_v31  ;;  %v383_v31 = vld [vmem:[%s2106_s11 + $0xf0] sm:$0xff] }
  0xd8   : > { %1444 = vmatpush1.bf16.msra.mxu0 %v1443_v34  ;;  %1476 = vmatpush1.bf16.msra.mxu1 %v1443_v34  ;;  %v513_v34 = vld [vmem:[#allocation2 + $0x100] sm:$0xff] }
  0xdb   : > { %610 = vmatmul.mubr.f32.vlgmr.msra.gmra.mrb[0].mxu0 %v353_v35  ;;  %706 = vmatmul.mubr.f32.vlgmr.msra.gmra.mrb[0].mxu1 %v385_v36  ;;  %v482_v35 = vld [vmem:[#allocation2 + $0x8] sm:$0xff] }
  0xdc   : > { %615 = vmatprep.mubr.f32.mxu0 %v356_v37  ;;  %711 = vmatprep.mubr.f32.mxu1 %v388_v38  ;;  %v514_v36 = vld [vmem:[#allocation2 + $0x108] sm:$0xff] }
  0xdf   : > { %616 = vmatmul.mubr.f32.gmra.mrb[2].mxu0 %v355_v39  ;;  %712 = vmatmul.mubr.f32.gmra.mrb[2].mxu1 %v387_v40 }
  0xe0   : > { %621 = vmatprep.mubr.f32.mxu0 %v358_v41  ;;  %717 = vmatprep.mubr.f32.mxu1 %v390_v42 }
  0xe3   : > { %622 = vmatmul.mubr.f32.gmra.mrb[4].mxu0 %v357_v43  ;;  %718 = vmatmul.mubr.f32.gmra.mrb[4].mxu1 %v389_v44 }
  0xe4   : > { %627 = vmatprep.mubr.f32.mxu0 %v360_v45  ;;  %723 = vmatprep.mubr.f32.mxu1 %v392_v46  ;;  %v483_v45 = vld [vmem:[#allocation2 + $0x10] sm:$0xff] }
  0xe5   : > { %v515_v46 = vld [vmem:[#allocation2 + $0x110] sm:$0xff] }
  0xe7   : > { %628 = vmatmul.mubr.f32.gmra.mrb[6].mxu0 %v359_v47  ;;  %724 = vmatmul.mubr.f32.gmra.mrb[6].mxu1 %v391_v48  ;;  %v484_v47 = vld [vmem:[#allocation2 + $0x18] sm:$0xff] }
  0xe8   : > { %633 = vmatprep.mubr.f32.mxu0 %v362_v49  ;;  %729 = vmatprep.mubr.f32.mxu1 %v394_v50  ;;  %v516_v48 = vld [vmem:[#allocation2 + $0x118] sm:$0xff] }
  0xeb   : > { %634 = vmatmul.mubr.f32.gmra.mrb[8].mxu0 %v361_v51  ;;  %730 = vmatmul.mubr.f32.gmra.mrb[8].mxu1 %v393_v52 }
  0xec   : > { %639 = vmatprep.mubr.f32.mxu0 %v364_v53  ;;  %735 = vmatprep.mubr.f32.mxu1 %v396_v54 }
  0xef   : > { %640 = vmatmul.mubr.f32.gmra.mrb[10].mxu0 %v363_v55  ;;  %736 = vmatmul.mubr.f32.gmra.mrb[10].mxu1 %v395_v56 }
  0xf0   : > { %645 = vmatprep.mubr.f32.mxu0 %v366_v57  ;;  %741 = vmatprep.mubr.f32.mxu1 %v398_v58  ;;  %v485_v57 = vld [vmem:[#allocation2 + $0x20] sm:$0xff] }
  0xf1   : > { %v517_v58 = vld [vmem:[#allocation2 + $0x120] sm:$0xff] }
  0xf3   : > { %646 = vmatmul.mubr.f32.gmra.mrb[12].mxu0 %v365_v59  ;;  %742 = vmatmul.mubr.f32.gmra.mrb[12].mxu1 %v397_v60  ;;  %v486_v59 = vld [vmem:[#allocation2 + $0x28] sm:$0xff] }
  0xf4   : > { %651 = vmatprep.mubr.f32.mxu0 %v368_v61  ;;  %747 = vmatprep.mubr.f32.mxu1 %v400_v62  ;;  %v518_v60 = vld [vmem:[#allocation2 + $0x128] sm:$0xff] }
  0xf7   : > { %652 = vmatmul.mubr.f32.gmra.mrb[14].mxu0 %v367_v63  ;;  %748 = vmatmul.mubr.f32.gmra.mrb[14].mxu1 %v399_v0 }
  0xf8   : > { %657 = vmatprep.mubr.f32.mxu0 %v370_v1  ;;  %753 = vmatprep.mubr.f32.mxu1 %v402_v2 }
  0xfb   : > { %658 = vmatmul.mubr.f32.gmra.mrb[16].mxu0 %v369_v3  ;;  %754 = vmatmul.mubr.f32.gmra.mrb[16].mxu1 %v401_v4 }
  0xfc   : > { %663 = vmatprep.mubr.f32.mxu0 %v372_v5  ;;  %759 = vmatprep.mubr.f32.mxu1 %v404_v6  ;;  %v487_v5 = vld [vmem:[#allocation2 + $0x30] sm:$0xff] }
  0xfd   : > { %v519_v6 = vld [vmem:[#allocation2 + $0x130] sm:$0xff] }
  0xff   : > { %664 = vmatmul.mubr.f32.gmra.mrb[18].mxu0 %v371_v7  ;;  %760 = vmatmul.mubr.f32.gmra.mrb[18].mxu1 %v403_v8  ;;  %v488_v7 = vld [vmem:[#allocation2 + $0x38] sm:$0xff] }
 0x100   : > { %669 = vmatprep.mubr.f32.mxu0 %v374_v9  ;;  %765 = vmatprep.mubr.f32.mxu1 %v406_v10  ;;  %v520_v8 = vld [vmem:[#allocation2 + $0x138] sm:$0xff] }
 0x103   : > { %670 = vmatmul.mubr.f32.gmra.mrb[20].mxu0 %v373_v11  ;;  %766 = vmatmul.mubr.f32.gmra.mrb[20].mxu1 %v405_v12 }
 0x104   : > { %675 = vmatprep.mubr.f32.mxu0 %v376_v13  ;;  %771 = vmatprep.mubr.f32.mxu1 %v408_v14 }
 0x107   : > { %676 = vmatmul.mubr.f32.gmra.mrb[22].mxu0 %v375_v15  ;;  %772 = vmatmul.mubr.f32.gmra.mrb[22].mxu1 %v407_v16 }
 0x108   : > { %681 = vmatprep.mubr.f32.mxu0 %v378_v17  ;;  %777 = vmatprep.mubr.f32.mxu1 %v410_v18  ;;  %v489_v17 = vld [vmem:[#allocation2 + $0x40] sm:$0xff] }
 0x109   : > { %v521_v18 = vld [vmem:[#allocation2 + $0x140] sm:$0xff] }
 0x10b   : > { %682 = vmatmul.mubr.f32.gmra.mrb[24].mxu0 %v377_v19  ;;  %778 = vmatmul.mubr.f32.gmra.mrb[24].mxu1 %v409_v20  ;;  %v490_v19 = vld [vmem:[#allocation2 + $0x48] sm:$0xff] }
 0x10c   : > { %687 = vmatprep.mubr.f32.mxu0 %v380_v21  ;;  %783 = vmatprep.mubr.f32.mxu1 %v412_v22  ;;  %v522_v20 = vld [vmem:[#allocation2 + $0x148] sm:$0xff] }
 0x10f   : > { %688 = vmatmul.mubr.f32.gmra.mrb[26].mxu0 %v379_v23  ;;  %784 = vmatmul.mubr.f32.gmra.mrb[26].mxu1 %v411_v24 }
 0x110   : > { %693 = vmatprep.mubr.f32.mxu0 %v382_v25  ;;  %789 = vmatprep.mubr.f32.mxu1 %v414_v26 }
 0x113   : > { %694 = vmatmul.mubr.f32.gmra.mrb[28].mxu0 %v381_v27  ;;  %790 = vmatmul.mubr.f32.gmra.mrb[28].mxu1 %v413_v28 }
 0x114   : > { %699 = vmatprep.mubr.f32.mxu0 %v384_v29  ;;  %795 = vmatprep.mubr.f32.mxu1 %v416_v30  ;;  %v491_v29 = vld [vmem:[#allocation2 + $0x50] sm:$0xff] }
 0x115   : > { %v523_v30 = vld [vmem:[#allocation2 + $0x150] sm:$0xff] }
 0x117   : > { %700 = vmatmul.mubr.f32.gmra.mrb[30].mxu0 %v383_v31  ;;  %796 = vmatmul.mubr.f32.gmra.mrb[30].mxu1 %v415_v32  ;;  %v492_v31 = vld [vmem:[#allocation2 + $0x58] sm:$0xff] }
 0x118   : > { %v524_v32 = vld [vmem:[#allocation2 + $0x158] sm:$0xff] }
 0x1ae   : > { %v611_v37 = vpop.f32.mrb[0].mxu0  ;;  %v707_v38 = vpop.f32.mrb[0].mxu1 }
 0x1af   : > { %v802_v39 = vadd.f32 %v611_v37, %v481_v33  ;;  %v834_v40 = vadd.f32 %v707_v38, %v513_v34  ;;  %v613_v41 = vpop.f32.mrb[1].mxu0  ;;  %v709_v42 = vpop.f32.mrb[1].mxu1 }
 0x1b0   : > { %v803_v43 = vadd.f32 %v613_v41, %v482_v35  ;;  %v835_v44 = vadd.f32 %v709_v42, %v514_v36  ;;  %v493_v41 = vld [vmem:[#allocation2 + $0x60] sm:$0xff] }
 0x1b1   : > { %866 = vst [vmem:[#allocation2] sm:$0xff] %v802_v39  ;;  %898 = vst [vmem:[#allocation2 + $0x100] sm:$0xff] %v834_v40  ;;  %v525_v42 = vld [vmem:[#allocation2 + $0x160] sm:$0xff] }
 0x1b2   : > { %867 = vst [vmem:[#allocation2 + $0x8] sm:$0xff] %v803_v43  ;;  %899 = vst [vmem:[#allocation2 + $0x108] sm:$0xff] %v835_v44  ;;  %v617_v49 = vpop.f32.mrb[2].mxu0  ;;  %v713_v50 = vpop.f32.mrb[2].mxu1  ;;  %v494_v43 = vld [vmem:[#allocation2 + $0x68] sm:$0xff] }
 0x1b3   : > { %v804_v51 = vadd.f32 %v617_v49, %v483_v45  ;;  %v836_v52 = vadd.f32 %v713_v50, %v515_v46  ;;  %v619_v53 = vpop.f32.mrb[3].mxu0  ;;  %v715_v54 = vpop.f32.mrb[3].mxu1  ;;  %v526_v44 = vld [vmem:[#allocation2 + $0x168] sm:$0xff] }
 0x1b4   : > { %v805_v55 = vadd.f32 %v619_v53, %v484_v47  ;;  %v837_v56 = vadd.f32 %v715_v54, %v516_v48  ;;  %v495_v53 = vld [vmem:[#allocation2 + $0x70] sm:$0xff] }
 0x1b5   : > { %868 = vst [vmem:[#allocation2 + $0x10] sm:$0xff] %v804_v51  ;;  %900 = vst [vmem:[#allocation2 + $0x110] sm:$0xff] %v836_v52  ;;  %v527_v54 = vld [vmem:[#allocation2 + $0x170] sm:$0xff] }
 0x1b6   : > { %869 = vst [vmem:[#allocation2 + $0x18] sm:$0xff] %v805_v55  ;;  %901 = vst [vmem:[#allocation2 + $0x118] sm:$0xff] %v837_v56  ;;  %v623_v61 = vpop.f32.mrb[4].mxu0  ;;  %v719_v62 = vpop.f32.mrb[4].mxu1  ;;  %v496_v55 = vld [vmem:[#allocation2 + $0x78] sm:$0xff] }
 0x1b7   : > { %v806_v63 = vadd.f32 %v623_v61, %v485_v57  ;;  %v838_v0 = vadd.f32 %v719_v62, %v517_v58  ;;  %v625_v1 = vpop.f32.mrb[5].mxu0  ;;  %v721_v2 = vpop.f32.mrb[5].mxu1  ;;  %v528_v56 = vld [vmem:[#allocation2 + $0x178] sm:$0xff] }
 0x1b8   : > { %v807_v3 = vadd.f32 %v625_v1, %v486_v59  ;;  %v839_v4 = vadd.f32 %v721_v2, %v518_v60  ;;  %v497_v1 = vld [vmem:[#allocation2 + $0x80] sm:$0xff] }
 0x1b9   : > { %870 = vst [vmem:[#allocation2 + $0x20] sm:$0xff] %v806_v63  ;;  %902 = vst [vmem:[#allocation2 + $0x120] sm:$0xff] %v838_v0  ;;  %v529_v2 = vld [vmem:[#allocation2 + $0x180] sm:$0xff] }
 0x1ba   : > { %871 = vst [vmem:[#allocation2 + $0x28] sm:$0xff] %v807_v3  ;;  %903 = vst [vmem:[#allocation2 + $0x128] sm:$0xff] %v839_v4  ;;  %v629_v9 = vpop.f32.mrb[6].mxu0  ;;  %v725_v10 = vpop.f32.mrb[6].mxu1  ;;  %v498_v3 = vld [vmem:[#allocation2 + $0x88] sm:$0xff] }
 0x1bb   : > { %v808_v11 = vadd.f32 %v629_v9, %v487_v5  ;;  %v840_v12 = vadd.f32 %v725_v10, %v519_v6  ;;  %v631_v13 = vpop.f32.mrb[7].mxu0  ;;  %v727_v14 = vpop.f32.mrb[7].mxu1  ;;  %v530_v4 = vld [vmem:[#allocation2 + $0x188] sm:$0xff] }
 0x1bc   : > { %v809_v15 = vadd.f32 %v631_v13, %v488_v7  ;;  %v841_v16 = vadd.f32 %v727_v14, %v520_v8  ;;  %v499_v13 = vld [vmem:[#allocation2 + $0x90] sm:$0xff] }
 0x1bd   : > { %872 = vst [vmem:[#allocation2 + $0x30] sm:$0xff] %v808_v11  ;;  %904 = vst [vmem:[#allocation2 + $0x130] sm:$0xff] %v840_v12  ;;  %v531_v14 = vld [vmem:[#allocation2 + $0x190] sm:$0xff] }
 0x1be   : > { %873 = vst [vmem:[#allocation2 + $0x38] sm:$0xff] %v809_v15  ;;  %905 = vst [vmem:[#allocation2 + $0x138] sm:$0xff] %v841_v16  ;;  %v635_v21 = vpop.f32.mrb[8].mxu0  ;;  %v731_v22 = vpop.f32.mrb[8].mxu1  ;;  %v500_v15 = vld [vmem:[#allocation2 + $0x98] sm:$0xff] }
 0x1bf   : > { %v810_v23 = vadd.f32 %v635_v21, %v489_v17  ;;  %v842_v24 = vadd.f32 %v731_v22, %v521_v18  ;;  %v637_v25 = vpop.f32.mrb[9].mxu0  ;;  %v733_v26 = vpop.f32.mrb[9].mxu1  ;;  %v532_v16 = vld [vmem:[#allocation2 + $0x198] sm:$0xff] }
 0x1c0   : > { %v811_v27 = vadd.f32 %v637_v25, %v490_v19  ;;  %v843_v28 = vadd.f32 %v733_v26, %v522_v20  ;;  %v501_v25 = vld [vmem:[#allocation2 + $0xa0] sm:$0xff] }
 0x1c1   : > { %874 = vst [vmem:[#allocation2 + $0x40] sm:$0xff] %v810_v23  ;;  %906 = vst [vmem:[#allocation2 + $0x140] sm:$0xff] %v842_v24  ;;  %v533_v26 = vld [vmem:[#allocation2 + $0x1a0] sm:$0xff] }
 0x1c2   : > { %875 = vst [vmem:[#allocation2 + $0x48] sm:$0xff] %v811_v27  ;;  %907 = vst [vmem:[#allocation2 + $0x148] sm:$0xff] %v843_v28  ;;  %v641_v33 = vpop.f32.mrb[10].mxu0  ;;  %v737_v34 = vpop.f32.mrb[10].mxu1  ;;  %v502_v27 = vld [vmem:[#allocation2 + $0xa8] sm:$0xff] }
 0x1c3   : > { %v812_v35 = vadd.f32 %v641_v33, %v491_v29  ;;  %v844_v36 = vadd.f32 %v737_v34, %v523_v30  ;;  %v643_v37 = vpop.f32.mrb[11].mxu0  ;;  %v739_v38 = vpop.f32.mrb[11].mxu1  ;;  %v534_v28 = vld [vmem:[#allocation2 + $0x1a8] sm:$0xff] }
 0x1c4   : > { %v813_v39 = vadd.f32 %v643_v37, %v492_v31  ;;  %v845_v40 = vadd.f32 %v739_v38, %v524_v32  ;;  %v503_v37 = vld [vmem:[#allocation2 + $0xb0] sm:$0xff] }
 0x1c5   : > { %876 = vst [vmem:[#allocation2 + $0x50] sm:$0xff] %v812_v35  ;;  %908 = vst [vmem:[#allocation2 + $0x150] sm:$0xff] %v844_v36  ;;  %v535_v38 = vld [vmem:[#allocation2 + $0x1b0] sm:$0xff] }
 0x1c6   : > { %877 = vst [vmem:[#allocation2 + $0x58] sm:$0xff] %v813_v39  ;;  %909 = vst [vmem:[#allocation2 + $0x158] sm:$0xff] %v845_v40  ;;  %v647_v45 = vpop.f32.mrb[12].mxu0  ;;  %v743_v46 = vpop.f32.mrb[12].mxu1  ;;  %v504_v39 = vld [vmem:[#allocation2 + $0xb8] sm:$0xff] }
 0x1c7   : > { %v814_v47 = vadd.f32 %v647_v45, %v493_v41  ;;  %v846_v48 = vadd.f32 %v743_v46, %v525_v42  ;;  %v649_v49 = vpop.f32.mrb[13].mxu0  ;;  %v745_v50 = vpop.f32.mrb[13].mxu1  ;;  %v536_v40 = vld [vmem:[#allocation2 + $0x1b8] sm:$0xff] }
 0x1c8   : > { %v815_v51 = vadd.f32 %v649_v49, %v494_v43  ;;  %v847_v52 = vadd.f32 %v745_v50, %v526_v44  ;;  %v505_v49 = vld [vmem:[#allocation2 + $0xc0] sm:$0xff] }
 0x1c9   : > { %878 = vst [vmem:[#allocation2 + $0x60] sm:$0xff] %v814_v47  ;;  %910 = vst [vmem:[#allocation2 + $0x160] sm:$0xff] %v846_v48  ;;  %v537_v50 = vld [vmem:[#allocation2 + $0x1c0] sm:$0xff] }
 0x1ca   : > { %879 = vst [vmem:[#allocation2 + $0x68] sm:$0xff] %v815_v51  ;;  %911 = vst [vmem:[#allocation2 + $0x168] sm:$0xff] %v847_v52  ;;  %v653_v57 = vpop.f32.mrb[14].mxu0  ;;  %v749_v58 = vpop.f32.mrb[14].mxu1  ;;  %v506_v51 = vld [vmem:[#allocation2 + $0xc8] sm:$0xff] }
 0x1cb   : > { %v816_v59 = vadd.f32 %v653_v57, %v495_v53  ;;  %v848_v60 = vadd.f32 %v749_v58, %v527_v54  ;;  %v655_v61 = vpop.f32.mrb[15].mxu0  ;;  %v751_v62 = vpop.f32.mrb[15].mxu1  ;;  %v538_v52 = vld [vmem:[#allocation2 + $0x1c8] sm:$0xff] }
 0x1cc   : > { %v817_v63 = vadd.f32 %v655_v61, %v496_v55  ;;  %v849_v0 = vadd.f32 %v751_v62, %v528_v56  ;;  %v507_v61 = vld [vmem:[#allocation2 + $0xd0] sm:$0xff] }
 0x1cd   : > { %880 = vst [vmem:[#allocation2 + $0x70] sm:$0xff] %v816_v59  ;;  %912 = vst [vmem:[#allocation2 + $0x170] sm:$0xff] %v848_v60  ;;  %v539_v62 = vld [vmem:[#allocation2 + $0x1d0] sm:$0xff] }
 0x1ce   : > { %881 = vst [vmem:[#allocation2 + $0x78] sm:$0xff] %v817_v63  ;;  %913 = vst [vmem:[#allocation2 + $0x178] sm:$0xff] %v849_v0  ;;  %v659_v5 = vpop.f32.mrb[16].mxu0  ;;  %v755_v6 = vpop.f32.mrb[16].mxu1  ;;  %v508_v63 = vld [vmem:[#allocation2 + $0xd8] sm:$0xff] }
 0x1cf   : > { %v818_v7 = vadd.f32 %v659_v5, %v497_v1  ;;  %v850_v8 = vadd.f32 %v755_v6, %v529_v2  ;;  %v661_v9 = vpop.f32.mrb[17].mxu0  ;;  %v757_v10 = vpop.f32.mrb[17].mxu1  ;;  %v540_v0 = vld [vmem:[#allocation2 + $0x1d8] sm:$0xff] }
 0x1d0   : > { %v819_v11 = vadd.f32 %v661_v9, %v498_v3  ;;  %v851_v12 = vadd.f32 %v757_v10, %v530_v4  ;;  %v509_v9 = vld [vmem:[#allocation2 + $0xe0] sm:$0xff] }
 0x1d1   : > { %882 = vst [vmem:[#allocation2 + $0x80] sm:$0xff] %v818_v7  ;;  %914 = vst [vmem:[#allocation2 + $0x180] sm:$0xff] %v850_v8  ;;  %v541_v10 = vld [vmem:[#allocation2 + $0x1e0] sm:$0xff] }
 0x1d2   : > { %883 = vst [vmem:[#allocation2 + $0x88] sm:$0xff] %v819_v11  ;;  %915 = vst [vmem:[#allocation2 + $0x188] sm:$0xff] %v851_v12  ;;  %v665_v17 = vpop.f32.mrb[18].mxu0  ;;  %v761_v18 = vpop.f32.mrb[18].mxu1  ;;  %v510_v11 = vld [vmem:[#allocation2 + $0xe8] sm:$0xff] }
 0x1d3   : > { %v820_v19 = vadd.f32 %v665_v17, %v499_v13  ;;  %v852_v20 = vadd.f32 %v761_v18, %v531_v14  ;;  %v667_v21 = vpop.f32.mrb[19].mxu0  ;;  %v763_v22 = vpop.f32.mrb[19].mxu1  ;;  %v542_v12 = vld [vmem:[#allocation2 + $0x1e8] sm:$0xff] }
 0x1d4   : > { %v821_v23 = vadd.f32 %v667_v21, %v500_v15  ;;  %v853_v24 = vadd.f32 %v763_v22, %v532_v16  ;;  %v511_v21 = vld [vmem:[#allocation2 + $0xf0] sm:$0xff] }
 0x1d5   : > { %884 = vst [vmem:[#allocation2 + $0x90] sm:$0xff] %v820_v19  ;;  %916 = vst [vmem:[#allocation2 + $0x190] sm:$0xff] %v852_v20  ;;  %v543_v22 = vld [vmem:[#allocation2 + $0x1f0] sm:$0xff] }
 0x1d6   : > { %885 = vst [vmem:[#allocation2 + $0x98] sm:$0xff] %v821_v23  ;;  %917 = vst [vmem:[#allocation2 + $0x198] sm:$0xff] %v853_v24  ;;  %v671_v29 = vpop.f32.mrb[20].mxu0  ;;  %v767_v30 = vpop.f32.mrb[20].mxu1  ;;  %v512_v23 = vld [vmem:[#allocation2 + $0xf8] sm:$0xff] }
 0x1d7   : > { %v822_v31 = vadd.f32 %v671_v29, %v501_v25  ;;  %v854_v32 = vadd.f32 %v767_v30, %v533_v26  ;;  %v673_v33 = vpop.f32.mrb[21].mxu0  ;;  %v769_v34 = vpop.f32.mrb[21].mxu1  ;;  %v544_v24 = vld [vmem:[#allocation2 + $0x1f8] sm:$0xff] }
 0x1d8   : > { %v823_v35 = vadd.f32 %v673_v33, %v502_v27  ;;  %v855_v36 = vadd.f32 %v769_v34, %v534_v28  ;;  %v1000_v33 = vlaneseq (!%p1369_p7) }
 0x1d9   : > { %886 = vst [vmem:[#allocation2 + $0xa0] sm:$0xff] %v822_v31  ;;  %918 = vst [vmem:[#allocation2 + $0x1a0] sm:$0xff] %v854_v32 }
 0x1da   : > { %887 = vst [vmem:[#allocation2 + $0xa8] sm:$0xff] %v823_v35  ;;  %919 = vst [vmem:[#allocation2 + $0x1a8] sm:$0xff] %v855_v36  ;;  %v677_v41 = vpop.f32.mrb[22].mxu0  ;;  %v773_v42 = vpop.f32.mrb[22].mxu1  ;;  %v1001_v34 = vshrl.u32 (!%p1369_p7), %v1000_v33, 7  ;;  %v934_v36 = vld [vmem:[#allocation2] sm:$0xff] (!%p1369_p7) }
 0x1db   : > { %v824_v43 = vadd.f32 %v677_v41, %v503_v37  ;;  %v856_v44 = vadd.f32 %v773_v42, %v535_v38  ;;  %v679_v45 = vpop.f32.mrb[23].mxu0  ;;  %v775_v46 = vpop.f32.mrb[23].mxu1  ;;  %v998_v35 = vld [vmem:[%s2578_s28] sm:$0x3] (!%p1369_p7)  ;;  %v935_v38 = vld [vmem:[#allocation2 + $0x8] sm:$0xff] (!%p1369_p7)  ;;  %v937_v41 = vld [vmem:[#allocation2 + $0x18] sm:$0xff] (!%p1369_p7) }
 0x1dc   : > { %v825_v47 = vadd.f32 %v679_v45, %v504_v39  ;;  %v857_v48 = vadd.f32 %v775_v46, %v536_v40  ;;  %v1002_v37 = vsub.s32 (!%p1369_p7), 0, %v1001_v34  ;;  %v1006_v39 = vsub.s32 (!%p1369_p7), 1, %v1001_v34  ;;  %v936_v40 = vld [vmem:[#allocation2 + $0x10] sm:$0xff] (!%p1369_p7)  ;;  %v938_v42 = vld [vmem:[#allocation2 + $0x20] sm:$0xff] (!%p1369_p7)  ;;  %v939_v45 = vld [vmem:[#allocation2 + $0x28] sm:$0xff] (!%p1369_p7) }
 0x1dd   : > { %888 = vst [vmem:[#allocation2 + $0xb0] sm:$0xff] %v824_v43  ;;  %920 = vst [vmem:[#allocation2 + $0x1b0] sm:$0xff] %v856_v44  ;;  %v940_v46 = vld [vmem:[#allocation2 + $0x30] sm:$0xff] (!%p1369_p7) }
 0x1de   : > { %889 = vst [vmem:[#allocation2 + $0xb8] sm:$0xff] %v825_v47  ;;  %921 = vst [vmem:[#allocation2 + $0x1b8] sm:$0xff] %v857_v48  ;;  %v683_v53 = vpop.f32.mrb[24].mxu0  ;;  %v779_v54 = vpop.f32.mrb[24].mxu1  ;;  %v2321_v43 = vrot.slane (!%p1369_p7), %v998_v35, %v1002_v37  ;;  %v2323_v44 = vrot.slane (!%p1369_p7), %v998_v35, %v1006_v39  ;;  %v941_v47 = vld [vmem:[#allocation2 + $0x38] sm:$0xff] (!%p1369_p7) }
 0x1df   : > { %v826_v55 = vadd.f32 %v683_v53, %v505_v49  ;;  %v858_v56 = vadd.f32 %v779_v54, %v537_v50  ;;  %v685_v57 = vpop.f32.mrb[25].mxu0  ;;  %v781_v58 = vpop.f32.mrb[25].mxu1  ;;  %v943_v53 = vld [vmem:[#allocation2 + $0x48] sm:$0xff] (!%p1369_p7)  ;;  %v944_v54 = vld [vmem:[#allocation2 + $0x50] sm:$0xff] (!%p1369_p7) }
 0x1e0   : > { %v827_v59 = vadd.f32 %v685_v57, %v506_v51  ;;  %v859_v60 = vadd.f32 %v781_v58, %v538_v52  ;;  %v1010_v48 = vadd.f32 (!%p1369_p7), %v2321_v43, %v934_v36  ;;  %v1011_v49 = vadd.f32 (!%p1369_p7), %v2323_v44, %v935_v38  ;;  %v942_v52 = vld [vmem:[#allocation2 + $0x40] sm:$0xff] (!%p1369_p7) }
 0x1e1   : > { %890 = vst [vmem:[#allocation2 + $0xc0] sm:$0xff] %v826_v55  ;;  %922 = vst [vmem:[#allocation2 + $0x1c0] sm:$0xff] %v858_v56  ;;  %v1012_v50 = vadd.f32 (!%p1369_p7), %v2321_v43, %v936_v40  ;;  %v1013_v51 = vadd.f32 (!%p1369_p7), %v2323_v44, %v937_v41  ;;  %v1014_v55 = vadd.f32 (!%p1369_p7), %v2321_v43, %v938_v42 }
 0x1e2   : > { %891 = vst [vmem:[#allocation2 + $0xc8] sm:$0xff] %v827_v59  ;;  %923 = vst [vmem:[#allocation2 + $0x1c8] sm:$0xff] %v859_v60  ;;  %v689_v1 = vpop.f32.mrb[26].mxu0  ;;  %v785_v2 = vpop.f32.mrb[26].mxu1  ;;  %v1015_v56 = vadd.f32 (!%p1369_p7), %v2323_v44, %v939_v45  ;;  %v1016_v57 = vadd.f32 (!%p1369_p7), %v2321_v43, %v940_v46  ;;  %v1017_v58 = vadd.f32 (!%p1369_p7), %v2323_v44, %v941_v47  ;;  %v945_v59 = vld [vmem:[#allocation2 + $0x58] sm:$0xff] (!%p1369_p7)  ;;  %v946_v60 = vld [vmem:[#allocation2 + $0x60] sm:$0xff] (!%p1369_p7) }
 0x1e3   : > { %v828_v3 = vadd.f32 %v689_v1, %v507_v61  ;;  %v860_v4 = vadd.f32 %v785_v2, %v539_v62  ;;  %v691_v5 = vpop.f32.mrb[27].mxu0  ;;  %v787_v6 = vpop.f32.mrb[27].mxu1  ;;  %v947_v61 = vld [vmem:[#allocation2 + $0x68] sm:$0xff] (!%p1369_p7)  ;;  %v1074_v62 = vmax.f32 (!%p1369_p7), %v1010_v48, 0.0  ;;  %v1077_v1 = vmax.f32 (!%p1369_p7), %v1013_v51, 0.0  ;;  %v948_v2 = vld [vmem:[#allocation2 + $0x70] sm:$0xff] (!%p1369_p7) }
 0x1e4   : > { %v829_v7 = vadd.f32 %v691_v5, %v508_v63  ;;  %v861_v8 = vadd.f32 %v787_v6, %v540_v0  ;;  %v1075_v63 = vmax.f32 (!%p1369_p7), %v1011_v49, 0.0  ;;  %v1076_v0 = vmax.f32 (!%p1369_p7), %v1012_v50, 0.0 }
 0x1e5   : > { %892 = vst [vmem:[#allocation2 + $0xd0] sm:$0xff] %v828_v3  ;;  %924 = vst [vmem:[#allocation2 + $0x1d0] sm:$0xff] %v860_v4  ;;  %v949_v3 = vld [vmem:[#allocation2 + $0x78] sm:$0xff] (!%p1369_p7)  ;;  %v1078_v4 = vmax.f32 (!%p1369_p7), %v1014_v55, 0.0  ;;  %v1079_v5 = vmax.f32 (!%p1369_p7), %v1015_v56, 0.0  ;;  %v1080_v6 = vmax.f32 (!%p1369_p7), %v1016_v57, 0.0 }
 0x1e6   : > { %893 = vst [vmem:[#allocation2 + $0xd8] sm:$0xff] %v829_v7  ;;  %925 = vst [vmem:[#allocation2 + $0x1d8] sm:$0xff] %v861_v8  ;;  %v695_v13 = vpop.f32.mrb[28].mxu0  ;;  %v791_v14 = vpop.f32.mrb[28].mxu1  ;;  %v1081_v7 = vmax.f32 (!%p1369_p7), %v1017_v58, 0.0  ;;  %v1018_v8 = vadd.f32 (!%p1369_p7), %v2321_v43, %v942_v52 }
 0x1e7   : > { %v830_v15 = vadd.f32 %v695_v13, %v509_v9  ;;  %v862_v16 = vadd.f32 %v791_v14, %v541_v10  ;;  %v697_v17 = vpop.f32.mrb[29].mxu0  ;;  %v793_v18 = vpop.f32.mrb[29].mxu1  ;;  %1138 = vst [vmem:[%s2122_s6] sm:$0xff] (!%p1369_p7), %v1074_v62  ;;  %1139 = vst [vmem:[%s2122_s6 + $0x8] sm:$0xff] (!%p1369_p7), %v1075_v63  ;;  %v1019_v9 = vadd.f32 (!%p1369_p7), %v2323_v44, %v943_v53  ;;  %v951_v13 = vld [vmem:[#allocation2 + $0x88] sm:$0xff] (!%p1369_p7)  ;;  %v952_v14 = vld [vmem:[#allocation2 + $0x90] sm:$0xff] (!%p1369_p7) }
 0x1e8   : > { %v831_v19 = vadd.f32 %v697_v17, %v510_v11  ;;  %v863_v20 = vadd.f32 %v793_v18, %v542_v12  ;;  %933 = sbr.rel (%p1369_p7) target bundleno = 523 (0x20b), region = 48  ;;  %1140 = vst [vmem:[%s2122_s6 + $0x10] sm:$0xff] (!%p1369_p7), %v1076_v0  ;;  %1141 = vst [vmem:[%s2122_s6 + $0x18] sm:$0xff] (!%p1369_p7), %v1077_v1  ;;  %v1020_v10 = vadd.f32 (!%p1369_p7), %v2321_v43, %v944_v54  ;;  %v950_v12 = vld [vmem:[#allocation2 + $0x80] sm:$0xff] (!%p1369_p7)  ;;  %v967_v63 = vld [vmem:[#allocation2 + $0x108] sm:$0xff] (!%p1369_p7) }
 0x1e9   : > { %894 = vst [vmem:[#allocation2 + $0xe0] sm:$0xff] %v830_v15  ;;  %926 = vst [vmem:[#allocation2 + $0x1e0] sm:$0xff] %v862_v16  ;;  %v1021_v11 = vadd.f32 (!%p1369_p7), %v2323_v44, %v945_v59  ;;  %v1022_v15 = vadd.f32 (!%p1369_p7), %v2321_v43, %v946_v60  ;;  %v1023_v16 = vadd.f32 (!%p1369_p7), %v2323_v44, %v947_v61  ;;  %v958_v36 = vld [vmem:[#allocation2 + $0xc0] sm:$0xff] (!%p1369_p7)  ;;  %v959_v37 = vld [vmem:[#allocation2 + $0xc8] sm:$0xff] (!%p1369_p7) }
 0x1ea   : > { %895 = vst [vmem:[#allocation2 + $0xe8] sm:$0xff] %v831_v19  ;;  %927 = vst [vmem:[#allocation2 + $0x1e8] sm:$0xff] %v863_v20  ;;  %v701_v25 = vpop.f32.mrb[30].mxu0  ;;  %v797_v26 = vpop.f32.mrb[30].mxu1  ;;  %v1024_v17 = vadd.f32 (!%p1369_p7), %v2321_v43, %v948_v2  ;;  %v1025_v18 = vadd.f32 (!%p1369_p7), %v2323_v44, %v949_v3  ;;  %v953_v19 = vld [vmem:[#allocation2 + $0x98] sm:$0xff] (!%p1369_p7)  ;;  %v954_v20 = vld [vmem:[#allocation2 + $0xa0] sm:$0xff] (!%p1369_p7)  ;;  %v1027_v33 = vadd.f32 (!%p1369_p7), %v2323_v44, %v951_v13 }
 0x1eb   : > { %v832_v27 = vadd.f32 %v701_v25, %v511_v21  ;;  %v864_v28 = vadd.f32 %v797_v26, %v543_v22  ;;  %v703_v29 = vpop.f32.mrb[31].mxu0  ;;  %v799_v30 = vpop.f32.mrb[31].mxu1  ;;  %1142 = vst [vmem:[%s2122_s6 + $0x20] sm:$0xff] (!%p1369_p7), %v1078_v4  ;;  %1143 = vst [vmem:[%s2122_s6 + $0x28] sm:$0xff] (!%p1369_p7), %v1079_v5  ;;  %v955_v21 = vld [vmem:[#allocation2 + $0xa8] sm:$0xff] (!%p1369_p7)  ;;  %v1082_v22 = vmax.f32 (!%p1369_p7), %v1018_v8, 0.0  ;;  %v1028_v34 = vadd.f32 (!%p1369_p7), %v2321_v43, %v952_v14 }
 0x1ec   : > { %v833_v31 = vadd.f32 %v703_v29, %v512_v23  ;;  %v865_v32 = vadd.f32 %v799_v30, %v544_v24  ;;  %1144 = vst [vmem:[%s2122_s6 + $0x30] sm:$0xff] (!%p1369_p7), %v1080_v6  ;;  %1145 = vst [vmem:[%s2122_s6 + $0x38] sm:$0xff] (!%p1369_p7), %v1081_v7  ;;  %v1083_v23 = vmax.f32 (!%p1369_p7), %v1019_v9, 0.0  ;;  %v1084_v24 = vmax.f32 (!%p1369_p7), %v1020_v10, 0.0  ;;  %v956_v26 = vld [vmem:[#allocation2 + $0xb0] sm:$0xff] (!%p1369_p7)  ;;  %v966_v62 = vld [vmem:[#allocation2 + $0x100] sm:$0xff] (!%p1369_p7) }
 0x1ed   : > { %896 = vst [vmem:[#allocation2 + $0xf0] sm:$0xff] %v832_v27  ;;  %928 = vst [vmem:[#allocation2 + $0x1f0] sm:$0xff] %v864_v28  ;;  %v1085_v25 = vmax.f32 (!%p1369_p7), %v1021_v11, 0.0  ;;  %v957_v27 = vld [vmem:[#allocation2 + $0xb8] sm:$0xff] (!%p1369_p7)  ;;  %v1086_v28 = vmax.f32 (!%p1369_p7), %v1022_v15, 0.0  ;;  %v1087_v29 = vmax.f32 (!%p1369_p7), %v1023_v16, 0.0  ;;  %v1029_v35 = vadd.f32 (!%p1369_p7), %v2323_v44, %v953_v19 }
 0x1ee   : > { %897 = vst [vmem:[#allocation2 + $0xf8] sm:$0xff] %v833_v31  ;;  %929 = vst [vmem:[#allocation2 + $0x1f8] sm:$0xff] %v865_v32  ;;  %v1088_v30 = vmax.f32 (!%p1369_p7), %v1024_v17, 0.0  ;;  %v1089_v31 = vmax.f32 (!%p1369_p7), %v1025_v18, 0.0  ;;  %v1026_v32 = vadd.f32 (!%p1369_p7), %v2321_v43, %v950_v12  ;;  %v960_v38 = vld [vmem:[#allocation2 + $0xd0] sm:$0xff] (!%p1369_p7)  ;;  %v1030_v39 = vadd.f32 (!%p1369_p7), %v2321_v43, %v954_v20  ;;  %v961_v45 = vld [vmem:[#allocation2 + $0xd8] sm:$0xff] (!%p1369_p7) }
 0x1ef   : > { %1146 = vst [vmem:[%s2122_s6 + $0x40] sm:$0xff] %v1082_v22  ;;  %1147 = vst [vmem:[%s2122_s6 + $0x48] sm:$0xff] %v1083_v23  ;;  %v1031_v40 = vadd.f32 %v2323_v44, %v955_v21  ;;  %v1032_v41 = vadd.f32 %v2321_v43, %v956_v26  ;;  %v1033_v42 = vadd.f32 %v2323_v44, %v957_v27  ;;  %v1091_v49 = vmax.f32 %v1027_v33, 0.0  ;;  %v968_v0 = vld [vmem:[#allocation2 + $0x110] sm:$0xff]  ;;  %v969_v5 = vld [vmem:[#allocation2 + $0x118] sm:$0xff] }
 0x1f0   : > { %1148 = vst [vmem:[%s2122_s6 + $0x50] sm:$0xff] %v1084_v24  ;;  %1149 = vst [vmem:[%s2122_s6 + $0x58] sm:$0xff] %v1085_v25  ;;  %v962_v46 = vld [vmem:[#allocation2 + $0xe0] sm:$0xff]  ;;  %v1090_v48 = vmax.f32 %v1026_v32, 0.0  ;;  %v1092_v50 = vmax.f32 %v1028_v34, 0.0  ;;  %v1093_v51 = vmax.f32 %v1029_v35, 0.0  ;;  %v1034_v58 = vadd.f32 %v2321_v43, %v958_v36 }
 0x1f1   : > { %1150 = vst [vmem:[%s2122_s6 + $0x60] sm:$0xff] %v1086_v28  ;;  %1151 = vst [vmem:[%s2122_s6 + $0x68] sm:$0xff] %v1087_v29  ;;  %v963_v47 = vld [vmem:[#allocation2 + $0xe8] sm:$0xff]  ;;  %v1094_v54 = vmax.f32 %v1030_v39, 0.0  ;;  %v1095_v55 = vmax.f32 %v1031_v40, 0.0  ;;  %v1096_v56 = vmax.f32 %v1032_v41, 0.0  ;;  %v1035_v59 = vadd.f32 %v2323_v44, %v959_v37 }
 0x1f2   : > { %1152 = vst [vmem:[%s2122_s6 + $0x70] sm:$0xff] %v1088_v30  ;;  %1153 = vst [vmem:[%s2122_s6 + $0x78] sm:$0xff] %v1089_v31  ;;  %v1097_v57 = vmax.f32 %v1033_v42, 0.0  ;;  %v1036_v60 = vadd.f32 %v2321_v43, %v960_v38  ;;  %v1037_v61 = vadd.f32 %v2323_v44, %v961_v45  ;;  %v1038_v1 = vadd.f32 %v2321_v43, %v962_v46  ;;  %v970_v6 = vld [vmem:[#allocation2 + $0x120] sm:$0xff]  ;;  %v971_v7 = vld [vmem:[#allocation2 + $0x128] sm:$0xff] }
 0x1f3   : > { %1154 = vst [vmem:[%s2122_s6 + $0x80] sm:$0xff] %v1090_v48  ;;  %1155 = vst [vmem:[%s2122_s6 + $0x88] sm:$0xff] %v1091_v49  ;;  %v1039_v2 = vadd.f32 %v2323_v44, %v963_v47  ;;  %v1098_v8 = vmax.f32 %v1034_v58, 0.0  ;;  %v1099_v9 = vmax.f32 %v1035_v59, 0.0  ;;  %v972_v12 = vld [vmem:[#allocation2 + $0x130] sm:$0xff]  ;;  %v973_v13 = vld [vmem:[#allocation2 + $0x138] sm:$0xff]  ;;  %v1042_v18 = vadd.f32 %v2321_v43, %v966_v62 }
 0x1f4   : > { %v964_v52 = vld [vmem:[#allocation2 + $0xf0] sm:$0xff]  ;;  %1156 = vst [vmem:[%s2122_s6 + $0x90] sm:$0xff] %v1092_v50  ;;  %1157 = vst [vmem:[%s2122_s6 + $0x98] sm:$0xff] %v1093_v51  ;;  %v1100_v10 = vmax.f32 %v1036_v60, 0.0  ;;  %v1101_v11 = vmax.f32 %v1037_v61, 0.0  ;;  %v1102_v14 = vmax.f32 %v1038_v1, 0.0  ;;  %v1043_v19 = vadd.f32 %v2323_v44, %v967_v63 }
 0x1f5   : > { %v965_v53 = vld [vmem:[#allocation2 + $0xf8] sm:$0xff]  ;;  %1158 = vst [vmem:[%s2122_s6 + $0xa0] sm:$0xff] %v1094_v54  ;;  %1159 = vst [vmem:[%s2122_s6 + $0xa8] sm:$0xff] %v1095_v55  ;;  %v1040_v3 = vadd.f32 %v2321_v43, %v964_v52  ;;  %v1103_v15 = vmax.f32 %v1039_v2, 0.0  ;;  %v1044_v20 = vadd.f32 %v2321_v43, %v968_v0  ;;  %v1045_v21 = vadd.f32 %v2323_v44, %v969_v5  ;;  %v974_v22 = vld [vmem:[#allocation2 + $0x140] sm:$0xff] }
 0x1f6   : > { %1160 = vst [vmem:[%s2122_s6 + $0xb0] sm:$0xff] %v1096_v56  ;;  %1161 = vst [vmem:[%s2122_s6 + $0xb8] sm:$0xff] %v1097_v57  ;;  %v1041_v4 = vadd.f32 %v2323_v44, %v965_v53  ;;  %v975_v23 = vld [vmem:[#allocation2 + $0x148] sm:$0xff]  ;;  %v976_v24 = vld [vmem:[#allocation2 + $0x150] sm:$0xff]  ;;  %v1046_v25 = vadd.f32 %v2321_v43, %v970_v6  ;;  %v1047_v26 = vadd.f32 %v2323_v44, %v971_v7  ;;  %v1106_v32 = vmax.f32 %v1042_v18, 0.0 }
 0x1f7   : > { %v1104_v16 = vmax.f32 %v1040_v3, 0.0  ;;  %1162 = vst [vmem:[%s2122_s6 + $0xc0] sm:$0xff] %v1098_v8  ;;  %1163 = vst [vmem:[%s2122_s6 + $0xc8] sm:$0xff] %v1099_v9  ;;  %v1048_v27 = vadd.f32 %v2321_v43, %v972_v12  ;;  %v1049_v28 = vadd.f32 %v2323_v44, %v973_v13  ;;  %v977_v29 = vld [vmem:[#allocation2 + $0x158] sm:$0xff]  ;;  %v978_v30 = vld [vmem:[#allocation2 + $0x160] sm:$0xff]  ;;  %v1107_v33 = vmax.f32 %v1043_v19, 0.0 }
 0x1f8   : > { %v1105_v17 = vmax.f32 %v1041_v4, 0.0  ;;  %1164 = vst [vmem:[%s2122_s6 + $0xd0] sm:$0xff] %v1100_v10  ;;  %1165 = vst [vmem:[%s2122_s6 + $0xd8] sm:$0xff] %v1101_v11  ;;  %v979_v31 = vld [vmem:[#allocation2 + $0x168] sm:$0xff]  ;;  %v1108_v34 = vmax.f32 %v1044_v20, 0.0  ;;  %v1109_v35 = vmax.f32 %v1045_v21, 0.0  ;;  %v1050_v42 = vadd.f32 %v2321_v43, %v974_v22 }
 0x1f9   : > { %1166 = vst [vmem:[%s2122_s6 + $0xe0] sm:$0xff] %v1102_v14  ;;  %1167 = vst [vmem:[%s2122_s6 + $0xe8] sm:$0xff] %v1103_v15  ;;  %v980_v36 = vld [vmem:[#allocation2 + $0x170] sm:$0xff]  ;;  %v981_v37 = vld [vmem:[#allocation2 + $0x178] sm:$0xff]  ;;  %v1110_v38 = vmax.f32 %v1046_v25, 0.0  ;;  %v1111_v39 = vmax.f32 %v1047_v26, 0.0  ;;  %v1051_v45 = vadd.f32 %v2323_v44, %v975_v23  ;;  %v1052_v46 = vadd.f32 %v2321_v43, %v976_v24 }
 0x1fa   : > { %1168 = vst [vmem:[%s2122_s6 + $0xf0] sm:$0xff] %v1104_v16  ;;  %1169 = vst [vmem:[%s2122_s6 + $0xf8] sm:$0xff] %v1105_v17  ;;  %v1112_v40 = vmax.f32 %v1048_v27, 0.0  ;;  %v1113_v41 = vmax.f32 %v1049_v28, 0.0  ;;  %v1053_v47 = vadd.f32 %v2323_v44, %v977_v29  ;;  %v982_v48 = vld [vmem:[#allocation2 + $0x180] sm:$0xff]  ;;  %v983_v49 = vld [vmem:[#allocation2 + $0x188] sm:$0xff]  ;;  %v1054_v51 = vadd.f32 %v2321_v43, %v978_v30 }
 0x1fb   : > { %1170 = vst [vmem:[%s2122_s6 + $0x100] sm:$0xff] %v1106_v32  ;;  %1171 = vst [vmem:[%s2122_s6 + $0x108] sm:$0xff] %v1107_v33  ;;  %v984_v50 = vld [vmem:[#allocation2 + $0x190] sm:$0xff]  ;;  %v1055_v52 = vadd.f32 %v2323_v44, %v979_v31  ;;  %v1056_v53 = vadd.f32 %v2321_v43, %v980_v36  ;;  %v1057_v54 = vadd.f32 %v2323_v44, %v981_v37  ;;  %v985_v55 = vld [vmem:[#allocation2 + $0x198] sm:$0xff]  ;;  %v1114_v58 = vmax.f32 %v1050_v42, 0.0 }
 0x1fc   : > { %1172 = vst [vmem:[%s2122_s6 + $0x110] sm:$0xff] %v1108_v34  ;;  %1173 = vst [vmem:[%s2122_s6 + $0x118] sm:$0xff] %v1109_v35  ;;  %v986_v56 = vld [vmem:[#allocation2 + $0x1a0] sm:$0xff]  ;;  %v987_v57 = vld [vmem:[#allocation2 + $0x1a8] sm:$0xff]  ;;  %v1115_v59 = vmax.f32 %v1051_v45, 0.0  ;;  %v1116_v60 = vmax.f32 %v1052_v46, 0.0  ;;  %v1058_v4 = vadd.f32 %v2321_v43, %v982_v48  ;;  %v1059_v5 = vadd.f32 %v2323_v44, %v983_v49 }
 0x1fd   : > { %1174 = vst [vmem:[%s2122_s6 + $0x120] sm:$0xff] %v1110_v38  ;;  %1175 = vst [vmem:[%s2122_s6 + $0x128] sm:$0xff] %v1111_v39  ;;  %v1117_v61 = vmax.f32 %v1053_v47, 0.0  ;;  %v988_v62 = vld [vmem:[#allocation2 + $0x1b0] sm:$0xff]  ;;  %v989_v63 = vld [vmem:[#allocation2 + $0x1b8] sm:$0xff]  ;;  %v1118_v0 = vmax.f32 %v1054_v51, 0.0  ;;  %v1060_v6 = vadd.f32 %v2321_v43, %v984_v50  ;;  %v1061_v7 = vadd.f32 %v2323_v44, %v985_v55 }
 0x1fe   : > { %1176 = vst [vmem:[%s2122_s6 + $0x130] sm:$0xff] %v1112_v40  ;;  %1177 = vst [vmem:[%s2122_s6 + $0x138] sm:$0xff] %v1113_v41  ;;  %v1119_v1 = vmax.f32 %v1055_v52, 0.0  ;;  %v1120_v2 = vmax.f32 %v1056_v53, 0.0  ;;  %v1121_v3 = vmax.f32 %v1057_v54, 0.0  ;;  %v990_v8 = vld [vmem:[#allocation2 + $0x1c0] sm:$0xff]  ;;  %v1062_v11 = vadd.f32 %v2321_v43, %v986_v56 }
 0x1ff   : > { %1178 = vst [vmem:[%s2122_s6 + $0x140] sm:$0xff] %v1114_v58  ;;  %1179 = vst [vmem:[%s2122_s6 + $0x148] sm:$0xff] %v1115_v59  ;;  %v991_v9 = vld [vmem:[#allocation2 + $0x1c8] sm:$0xff]  ;;  %v992_v10 = vld [vmem:[#allocation2 + $0x1d0] sm:$0xff]  ;;  %v1063_v12 = vadd.f32 %v2323_v44, %v987_v57  ;;  %v1064_v13 = vadd.f32 %v2321_v43, %v988_v62  ;;  %v1065_v14 = vadd.f32 %v2323_v44, %v989_v63  ;;  %v1122_v18 = vmax.f32 %v1058_v4, 0.0 }
 0x200   : > { %1180 = vst [vmem:[%s2122_s6 + $0x150] sm:$0xff] %v1116_v60  ;;  %1181 = vst [vmem:[%s2122_s6 + $0x158] sm:$0xff] %v1117_v61  ;;  %v993_v15 = vld [vmem:[#allocation2 + $0x1d8] sm:$0xff]  ;;  %v994_v16 = vld [vmem:[#allocation2 + $0x1e0] sm:$0xff]  ;;  %v1123_v19 = vmax.f32 %v1059_v5, 0.0  ;;  %v1124_v20 = vmax.f32 %v1060_v6, 0.0  ;;  %v1066_v28 = vadd.f32 %v2321_v43, %v990_v8  ;;  %v1067_v29 = vadd.f32 %v2323_v44, %v991_v9 }
 0x201   : > { %1182 = vst [vmem:[%s2122_s6 + $0x160] sm:$0xff] %v1118_v0  ;;  %1183 = vst [vmem:[%s2122_s6 + $0x168] sm:$0xff] %v1119_v1  ;;  %v995_v17 = vld [vmem:[#allocation2 + $0x1e8] sm:$0xff]  ;;  %v1125_v21 = vmax.f32 %v1061_v7, 0.0  ;;  %v996_v22 = vld [vmem:[#allocation2 + $0x1f0] sm:$0xff]  ;;  %v1126_v24 = vmax.f32 %v1062_v11, 0.0  ;;  %v1068_v30 = vadd.f32 %v2321_v43, %v992_v10  ;;  %v1069_v31 = vadd.f32 %v2323_v44, %v993_v15 }
 0x202   : > { %1184 = vst [vmem:[%s2122_s6 + $0x170] sm:$0xff] %v1120_v2  ;;  %1185 = vst [vmem:[%s2122_s6 + $0x178] sm:$0xff] %v1121_v3  ;;  %v997_v23 = vld [vmem:[#allocation2 + $0x1f8] sm:$0xff]  ;;  %v1127_v25 = vmax.f32 %v1063_v12, 0.0  ;;  %v1128_v26 = vmax.f32 %v1064_v13, 0.0  ;;  %v1129_v27 = vmax.f32 %v1065_v14, 0.0  ;;  %v1070_v32 = vadd.f32 %v2321_v43, %v994_v16 }
 0x203   : > { %1186 = vst [vmem:[%s2122_s6 + $0x180] sm:$0xff] %v1122_v18  ;;  %1187 = vst [vmem:[%s2122_s6 + $0x188] sm:$0xff] %v1123_v19  ;;  %v1071_v33 = vadd.f32 %v2323_v44, %v995_v17  ;;  %v1072_v34 = vadd.f32 %v2321_v43, %v996_v22  ;;  %v1073_v35 = vadd.f32 %v2323_v44, %v997_v23  ;;  %v1130_v36 = vmax.f32 %v1066_v28, 0.0 }
 0x204   : > { %1188 = vst [vmem:[%s2122_s6 + $0x190] sm:$0xff] %v1124_v20  ;;  %1189 = vst [vmem:[%s2122_s6 + $0x198] sm:$0xff] %v1125_v21  ;;  %v1131_v37 = vmax.f32 %v1067_v29, 0.0  ;;  %v1132_v38 = vmax.f32 %v1068_v30, 0.0  ;;  %v1133_v39 = vmax.f32 %v1069_v31, 0.0  ;;  %v1134_v40 = vmax.f32 %v1070_v32, 0.0 }
 0x205   : > { %1190 = vst [vmem:[%s2122_s6 + $0x1a0] sm:$0xff] %v1126_v24  ;;  %1191 = vst [vmem:[%s2122_s6 + $0x1a8] sm:$0xff] %v1127_v25  ;;  %v1135_v41 = vmax.f32 %v1071_v33, 0.0  ;;  %v1136_v42 = vmax.f32 %v1072_v34, 0.0  ;;  %v1137_v45 = vmax.f32 %v1073_v35, 0.0 }
 0x206   : > { %1192 = vst [vmem:[%s2122_s6 + $0x1b0] sm:$0xff] %v1128_v26  ;;  %1193 = vst [vmem:[%s2122_s6 + $0x1b8] sm:$0xff] %v1129_v27 }
 0x207   : > { %1194 = vst [vmem:[%s2122_s6 + $0x1c0] sm:$0xff] %v1130_v36  ;;  %1195 = vst [vmem:[%s2122_s6 + $0x1c8] sm:$0xff] %v1131_v37 }
 0x208   : > { %1196 = vst [vmem:[%s2122_s6 + $0x1d0] sm:$0xff] %v1132_v38  ;;  %1197 = vst [vmem:[%s2122_s6 + $0x1d8] sm:$0xff] %v1133_v39 }
 0x209   : > { %1198 = vst [vmem:[%s2122_s6 + $0x1e0] sm:$0xff] %v1134_v40  ;;  %1199 = vst [vmem:[%s2122_s6 + $0x1e8] sm:$0xff] %v1135_v41 }
 0x20a   : > { %1200 = vst [vmem:[%s2122_s6 + $0x1f0] sm:$0xff] %v1136_v42  ;;  %1201 = vst [vmem:[%s2122_s6 + $0x1f8] sm:$0xff] %v1137_v45 }
 0x20b PF: > { %s2579_s15 = sld [smem:[#allocation13_spill]]  ;;  %s2580_s30 = sld [smem:[#allocation17_spill]] }
 0x20c   : > { %s1219_s8 = sshll.u32 %s2122_s6, 4  ;;  %s2464_s27 = scalar_lea.sflag [#allocation5], %s271_s21  ;;  %s2460_s8 = int_to_ptr.vmem [resolvable:$true] %s1219_s8 }
 0x20d   : > { %s1674_s29 = scalar_lea.vmem %s2460_s8, 8192  ;;  %p2581_p0 = scmp.ne.s32.totalorder %s2568_s18, 0 }
 0x20e   : > { %p1675_p12 = scmp.ne.s32.totalorder %s2460_s8, %s1674_s29  ;;  %s1832_s7 = smov [#allocation8]  }
 0x20f   : > { %s1678_s4 = sshll.u32 %s1832_s7, 4  ;;  %s1679_s4 = int_to_ptr.vmem [resolvable:$false] %s1678_s4 }
 0x210   : > { %p1676_p10 = pnand %p1675_p12, %p2581_p0  ;;  %s1680_s28 = scalar_lea.vmem %s1679_s4, 16384 }
 0x211   : > { %s1380_s11 = sshll.u32 %s2579_s15, 13  ;;  %p1681_p6 = scmp.lt.s32.totalorder %s2460_s8, %s1679_s4 }
 0x212   : > { %s2457_s5 = scalar_lea.hbm %s2580_s30, %s1380_s11  ;;  %p1677_p3 = pneg %p1676_p10 }
 0x213   : > { %p1682_p9 = scmp.lt.s32.totalorder %s1680_s28, %s1674_s29 }
 0x215   : > { %p1683_p1 = por %p1682_p9, %p1681_p6 }
 0x217   : > { %p1684_p11 = pnand %p1683_p1, %p1677_p3 }
 0x219   : > { %1687 = shalt.err (!%p1684_p11)
}
 0x21a   : > { %s1688_s21 = scalar_lea.hbm %s2457_s5, 8192  ;;  %s1692_s11 = scalar_lea.hbm %s2580_s30, 16384 }
 0x21b   : > { %p1689_p4 = scmp.ne.s32.totalorder %s2457_s5, %s1688_s21  ;;  %p1693_p5 = scmp.lt.u32.totalorder %s2457_s5, %s2580_s30 }
 0x21c   : > { %p1694_p13 = scmp.lt.u32.totalorder %s1692_s11, %s1688_s21  ;;  %p1696_p12 = scmp.lt.u32.totalorder %s1688_s21, %s2457_s5 }
 0x21d   : > { %p1690_p2 = pnand %p1689_p4, %p2581_p0 }
 0x21e   : > { %p1695_p7 = por %p1694_p13, %p1693_p5 }
 0x21f   : > { %p1691_p8 = pneg %p1690_p2 }
 0x220   : > { %p1697_p10 = por %p1696_p12, %p1695_p7 }
 0x222   : > { %p1698_p3 = pnand %p1697_p10, %p1691_p8 }
 0x224   : > { %1701 = shalt.err (!%p1698_p3)
}
 0x225   : > { %s1833_s29 = smov 256   ;;  %s1834_s7 = smov 16  }
 0x226   : > { %1481 = dma.vmem_to_hbm [thread:$0]  (%p2581_p0), %s2460_s8, 8192, %s2457_s5, %s2464_s27, %s1833_s29, %s1833_s29, %s1834_s7  }
 0x227 PF: > { %p1495_p6 = scmp.ge.s32.totalorder %s1824_s25, 2  ;;  %s1234_s4 = sand.u32 1, %s1772_s12  }
 0x228   : > { %p2582_p9 = scmp.ne.s32.totalorder %s2569_s3, 0  ;;  %s1235_s28 = scalar_lea.sflag [#allocation5], %s1234_s4 }
 0x22a   : > { %p1491_p1 = pnand %p1495_p6, %p2582_p9 }
 0x22c   : > { %1767 = dma.done.wait (!%p1491_p1), %s1235_s28, 8192  }
 0x22d   : > { %1769 = vsyncadd (!%p1491_p1), %s1235_s28, 4294959104  ;;  %s22_s25 = sadd.s32 1, %s1824_s25   ;;  %s2584_s3 = sld [smem:[#allocation14_spill]] }
 0x22e   : > { %p2493_p11 = scmp.ge.s32.totalorder %s22_s25, 6   ;;  %s2585_s5 = sld [smem:[#allocation15_spill]] }
 0x22f   : > { %s2587_s12 = smov %s1776_s13  ;;  %s2588_s13 = smov %s1780_s14 }
 0x230   : > { %s2589_s14 = smov %s1955_s9  ;;  %s2590_s15 = smov %s1788_s16 }
 0x231   : > { %s2591_s16 = smov %s1792_s17  ;;  %s2592_s17 = smov %s2031_s22 }
 0x232   : > { %s2593_s18 = smov %s1800_s19  ;;  %s2594_s19 = smov %s1804_s20 }
 0x233   : > { %s2595_s20 = smov %s1958_s10  ;;  %s2596_s21 = smov %s1816_s23 }
 0x234   : > { %s2597_s22 = smov %s1820_s24  ;;  %s2598_s23 = smov %s2584_s3 }
 0x235   : > { %s2599_s24 = smov %s2585_s5  ;;  %21 = sbr.rel (!%p2493_p11) target bundleno = 15 (0xf), region = 101 }
 0x23c   :  { %1240 = vsyncpa [#allocation4], 1 }
 0x23d   :  { %1242 = vsyncpa [#allocation4 + $0x1], 1 }
 0x23e   :  { %1243 = vsyncpa [#allocation7], 1 }
 0x23f   :  { %1245 = vsyncpa [#allocation7 + $0x1], 1 }
 0x240   :  { %1246 = vsyncpa [#allocation5], 1 }
 0x241   :  { %1248 = vsyncpa [#allocation5 + $0x1], 1 }

</bundles_post_ra>
